<compile_context>
chip_gen: v6e
topology: v6e:2x2x1
jax: 0.10.0
libtpu: 0.0.40
codegen_flags: <defaults>
</compile_context>

<pallas_src>
import jax
import jax.numpy as jnp
from jax import lax
from jax.experimental import pallas as pl
from jax.experimental.pallas import tpu as pltpu


def head_kernel(h_ref, m_ref, g_ref, beta_ref, w_ref, b_ref,
                o_ref, acc_ref, cnt_ref):
    """One (batch_tile, seq_tile) grid step.

    h_ref:   [TB, TS, H]  backbone hidden states (f32 or bf16)
    m_ref:   [TB, TS]     attention mask (original int dtype; lane-dense block)
    g_ref/beta_ref: [1, H] LayerNorm weight / bias (f32)
    w_ref:   [H, Tp]      fc weight, transposed + lane-padded (f32)
    b_ref:   [1, Tp]      fc bias, lane-padded (f32)
    o_ref:   [TB, Tp]     output logits (lane-dense padded slab)
    acc_ref: [TB, H] f32  masked-sum accumulator (VMEM scratch)
    cnt_ref: [TB, 1] f32  valid-token count accumulator (VMEM scratch)
    """
    s_idx = pl.program_id(1)

    @pl.when(s_idx == 0)
    def _init():
        acc_ref[...] = jnp.zeros_like(acc_ref)
        cnt_ref[...] = jnp.zeros_like(cnt_ref)

    # Masked partial sum over this seq tile, accumulated in f32.
    # Explicit f32 upcast before the multiply (v5e has no bf16 VPU path).
    h = h_ref[...].astype(jnp.float32)                    # [TB, TS, H]
    m = m_ref[...].astype(jnp.float32)                    # [TB, TS]
    acc_ref[...] += jnp.sum(h * m[:, :, None], axis=1)    # [TB, H]
    cnt_ref[...] += jnp.sum(m, axis=1, keepdims=True)     # [TB, 1]
    # NOTE: an MXU einsum('bsh,bs->bh') is possible here, but the kernel is
    # HBM-bandwidth bound, so the robust VPU+XLU form is kept.

    @pl.when(s_idx == pl.num_programs(1) - 1)
    def _finalize():
        # masked mean (torch.clamp(sum_mask, min=1e-9) semantics)
        cnt = jnp.maximum(cnt_ref[...], 1e-9)                 # [TB, 1]
        pooled = acc_ref[...] / cnt                           # [TB, H]

        # LayerNorm over hidden dim (eps = 1e-5, torch default)
        mean = jnp.mean(pooled, axis=-1, keepdims=True)
        var = jnp.mean((pooled - mean) ** 2, axis=-1, keepdims=True)
        normed = (pooled - mean) * lax.rsqrt(var + 1e-5)
        normed = normed * g_ref[...] + beta_ref[...]          # [TB, H]

        # fc: Linear(hidden_size -> target_size), lane-padded to Tp (dense vst)
        logits = jnp.dot(normed, w_ref[...],
                         preferred_element_type=jnp.float32) + b_ref[...]
        o_ref[...] = logits.astype(o_ref.dtype)


def _tpu_vmem_capacity_bytes():
    """Physical VMEM per TensorCore; conservative (v7x) fallback if unqueryable."""
    try:
        cap = getattr(pltpu.get_tpu_info(), "vmem_capacity_bytes", None)
        if cap:
            return int(cap)
    except Exception:
        pass
    return 64 * 1024 * 1024


def _round_up(x, m):
    return -(-x // m) * m


def _choose_tiles(B, S, H, Tp, h_itemsize, m_itemsize,
                  hidden_buf_budget, total_budget):
    """Pick (block_b, block_s).

    Prefers: (1) >= 2 batch tiles (so both v7x TensorCores get work),
    then (2) the largest hidden-state tile whose *total* double-buffered VMEM
    footprint (hidden + mask + resident params + output + scratch) fits budget.
    """
    def divisors(n):
        return [d for d in range(1, n + 1) if n % d == 0]

    # batch-tile candidates: sublane-aligned divisors of B (else whole B, still legal)
    b_cands = [d for d in divisors(B) if d % 8 == 0] or [B]
    # seq-tile candidates: lane-aligned divisors of S, or the full S
    s_cands = sorted({d for d in divisors(S) if d % 128 == 0} | {S})

    def vmem_total(bb, bs):
        rb = _round_up(bb, 8)
        hidden = 2 * bb * bs * H * h_itemsize                       # double-buffered
        mask = 2 * rb * _round_up(bs, 128) * m_itemsize             # lane-dense 2-D tile
        params = 2 * (H * Tp + Tp + 2 * H) * 4                      # w, b, gamma, beta
        out = 2 * rb * Tp * 4
        scratch = rb * H * 4 + rb * 128 * 4                         # acc + cnt (lane pad)
        return hidden + mask + params + out + scratch

    best = None
    for bb in b_cands:
        for bs in s_cands:
            hidden_tile = bb * bs * H * h_itemsize
            if hidden_tile > hidden_buf_budget:
                continue
            if vmem_total(bb, bs) > total_budget:
                continue
            megacore_ok = (B // bb) >= 2 or B == 1
            score = (megacore_ok, hidden_tile, bs)
            if best is None or score > best[0]:
                best = (score, bb, bs)
    if best is None:
        # Nothing fits the budget cleanly: fall back to the smallest legal tiles.
        return min(b_cands), min(s_cands)
    return best[1], best[2]


def custom_model_head(last_hidden_state, attention_mask,
                      ln_weight, ln_bias, fc_weight, fc_bias,
                      block_b=None, block_s=None):
    """last_hidden_state: [B,S,H] (f32 or bf16); attention_mask: [B,S] int;
       ln_weight/ln_bias: [H]; fc_weight: [T,H] (torch layout); fc_bias: [T]."""
    B, S, H = last_hidden_state.shape
    T = fc_weight.shape[0]
    Tp = max(128, _round_up(T, 128))   # lane-dense / MXU-aligned output width

    # Generation-aware VMEM sizing.
    vmem_cap = _tpu_vmem_capacity_bytes()
    if vmem_cap >= 100 * 1024 * 1024:          # v5e / v6e: 128 MiB physical VMEM
        vmem_limit = 64 * 1024 * 1024
        hidden_buf_budget = 12 * 1024 * 1024
    else:                                      # v7x: 64 MiB per TensorCore
        vmem_limit = 40 * 1024 * 1024
        hidden_buf_budget = 6 * 1024 * 1024
    total_budget = (3 * vmem_limit) // 4       # leave pipeline headroom

    h_item = jnp.dtype(last_hidden_state.dtype).itemsize
    m_item = jnp.dtype(attention_mask.dtype).itemsize
    auto_bb, auto_bs = _choose_tiles(B, S, H, Tp, h_item, m_item,
                                     hidden_buf_budget, total_budget)
    if block_b is None:
        block_b = auto_bb
    if block_s is None:
        block_s = auto_bs
    assert B % block_b == 0 and S % block_s == 0, (B, S, block_b, block_s)

    # Resident (broadcast) parameters — padded fc weight/bias are zero beyond T,
    # so the padded output columns are exactly fc_bias-pad = 0 and get sliced off.
    g = ln_weight.reshape(1, H).astype(jnp.float32)
    beta = ln_bias.reshape(1, H).astype(jnp.float32)
    w = jnp.zeros((H, Tp), jnp.float32).at[:, :T].set(fc_weight.T.astype(jnp.float32))
    b = jnp.zeros((1, Tp), jnp.float32).at[:, :T].set(fc_bias.astype(jnp.float32))

    grid = (B // block_b, S // block_s)   # seq (reduction) axis last

    out_padded = pl.pallas_call(
        head_kernel,
        out_shape=jax.ShapeDtypeStruct((B, Tp), jnp.float32),
        grid_spec=pltpu.PrefetchScalarGridSpec(
            num_scalar_prefetch=0,
            grid=grid,
            in_specs=[
                pl.BlockSpec((block_b, block_s, H), lambda bi, si: (bi, si, 0)),
                pl.BlockSpec((block_b, block_s), lambda bi, si: (bi, si)),
                pl.BlockSpec((1, H), lambda bi, si: (0, 0)),
                pl.BlockSpec((1, H), lambda bi, si: (0, 0)),
                pl.BlockSpec((H, Tp), lambda bi, si: (0, 0)),
                pl.BlockSpec((1, Tp), lambda bi, si: (0, 0)),
            ],
            out_specs=pl.BlockSpec((block_b, Tp), lambda bi, si: (bi, 0)),
            scratch_shapes=[pltpu.VMEM((block_b, H), jnp.float32),
                            pltpu.VMEM((block_b, 1), jnp.float32)],
        ),
        compiler_params=pltpu.CompilerParams(
            dimension_semantics=("parallel", "arbitrary"),
            vmem_limit_bytes=vmem_limit,
        ),
    )(last_hidden_state, attention_mask, g, beta, w, b)

    return out_padded[:, :T]


def reference_head(last_hidden_state, attention_mask,
                   ln_weight, ln_bias, fc_weight, fc_bias):
    h = last_hidden_state.astype(jnp.float32)
    me = attention_mask.astype(jnp.float32)[:, :, None]
    sum_emb = jnp.sum(h * me, axis=1)
    sum_mask = jnp.maximum(jnp.sum(me, axis=1), 1e-9)
    out = sum_emb / sum_mask
    mean = jnp.mean(out, axis=-1, keepdims=True)
    var = jnp.mean((out - mean) ** 2, axis=-1, keepdims=True)
    normed = (out - mean) / jnp.sqrt(var + 1e-5)
    normed = normed * ln_weight + ln_bias
    return normed @ fc_weight.T + fc_bias


if __name__ == "__main__":
    # Small shapes that still exercise the (batch, seq) grid.
    B, S, H, T = 16, 256, 128, 4          # batch, seq, hidden_size, target_size
    initializer_range = 0.02

    key = jax.random.PRNGKey(0)
    k_h, k_w = jax.random.split(key, 2)

    last_hidden_state = jax.random.normal(k_h, (B, S, H), dtype=jnp.float32)
    lengths = (jnp.arange(B, dtype=jnp.int32) * 13) % S + 1        # varied valid lengths
    attention_mask = (jnp.arange(S)[None, :] < lengths[:, None]).astype(jnp.int32)

    # Deterministic parameter init mirroring _init_weights:
    #   fc: weight ~ N(0, initializer_range), bias = 0; layer_norm1: weight=1, bias=0
    fc_weight = initializer_range * jax.random.normal(k_w, (T, H), dtype=jnp.float32)
    fc_bias = jnp.zeros((T,), dtype=jnp.float32)
    ln_weight = jnp.ones((H,), dtype=jnp.float32)
    ln_bias = jnp.zeros((H,), dtype=jnp.float32)

    # f32 activations, explicit tiles (grid = (2, 2): exercises the seq reduction path)
    out = custom_model_head(last_hidden_state, attention_mask,
                            ln_weight, ln_bias, fc_weight, fc_bias,
                            block_b=8, block_s=128)
    out = jax.block_until_ready(out)
    ref = reference_head(last_hidden_state, attention_mask,
                         ln_weight, ln_bias, fc_weight, fc_bias)
    assert out.shape == (B, T)
    assert jnp.allclose(out, ref, atol=1e-4, rtol=1e-4)

    # bf16 activations with auto tile selection (halves HBM bytes on the [B,S,H] read;
    # f32 accumulation inside the kernel).
    h_bf16 = last_hidden_state.astype(jnp.bfloat16)
    out_bf16 = jax.block_until_ready(
        custom_model_head(h_bf16, attention_mask, ln_weight, ln_bias,
                          fc_weight, fc_bias))
    ref_bf16 = reference_head(h_bf16.astype(jnp.float32), attention_mask,
                              ln_weight, ln_bias, fc_weight, fc_bias)
    assert jnp.allclose(out_bf16, ref_bf16, atol=1e-3, rtol=1e-3)

    print("KERNEL_OK")
</pallas_src>

<mosaic_0001>
module attributes {stable_mosaic.version = 11 : i64} {
  func.func @head_kernel(%arg0: i32, %arg1: i32, %arg2: memref<8x128x128xf32, #tpu.memory_space<vmem>>, %arg3: memref<8x128xi32, #tpu.memory_space<vmem>>, %arg4: memref<1x128xf32, #tpu.memory_space<vmem>>, %arg5: memref<1x128xf32, #tpu.memory_space<vmem>>, %arg6: memref<128x128xf32, #tpu.memory_space<vmem>>, %arg7: memref<1x128xf32, #tpu.memory_space<vmem>>, %arg8: memref<8x128xf32, #tpu.memory_space<vmem>>, %arg9: memref<8x128xf32, #tpu.memory_space<vmem>>, %arg10: memref<8x1xf32, #tpu.memory_space<vmem>>) attributes {dimension_semantics = [#tpu.dimension_semantics<parallel>, #tpu.dimension_semantics<arbitrary>], iteration_bounds = array<i64: 2, 2>, scalar_prefetch = 0 : i64, scratch_operands = 2 : i64, tpu.core_type = #tpu.core_type<tc>, window_params = [{transform_indices = @transform_0, window_bounds = array<i64: 8, 128, 128>}, {transform_indices = @transform_1, window_bounds = array<i64: 8, 128>}, {pipeline_mode = #tpu.pipeline_mode<synchronous>, transform_indices = @transform_2, window_bounds = array<i64: 1, 128>}, {pipeline_mode = #tpu.pipeline_mode<synchronous>, transform_indices = @transform_3, window_bounds = array<i64: 1, 128>}, {pipeline_mode = #tpu.pipeline_mode<synchronous>, transform_indices = @transform_4, window_bounds = array<i64: 128, 128>}, {pipeline_mode = #tpu.pipeline_mode<synchronous>, transform_indices = @transform_5, window_bounds = array<i64: 1, 128>}, {transform_indices = @transform_6, window_bounds = array<i64: 8, 128>}]} {
    %c0_i32 = arith.constant 0 : i32
    %0 = arith.cmpi eq, %arg1, %c0_i32 : i32
    %1 = arith.extui %0 : i1 to i32
    %c0_i32_0 = arith.constant 0 : i32
    %2 = arith.cmpi ne, %1, %c0_i32_0 : i32
    scf.if %2 {
      %cst_15 = arith.constant 0.000000e+00 : f32
      %21 = vector.broadcast %cst_15 : f32 to vector<8x128xf32>
      %c0_16 = arith.constant 0 : index
      %c0_17 = arith.constant 0 : index
      %22 = vector.load %arg9[%c0_16, %c0_17] : memref<8x128xf32, #tpu.memory_space<vmem>>, vector<8x128xf32>
      tpu.vector_store %arg9[%c0_16, %c0_17], %21 {strides = array<i32>} : memref<8x128xf32, #tpu.memory_space<vmem>>, vector<8x128xf32>,
      %cst_18 = arith.constant 0.000000e+00 : f32
      %23 = vector.broadcast %cst_18 : f32 to vector<8x1xf32>
      %c0_19 = arith.constant 0 : index
      %c0_20 = arith.constant 0 : index
      %24 = vector.load %arg10[%c0_19, %c0_20] : memref<8x1xf32, #tpu.memory_space<vmem>>, vector<8x1xf32>
      tpu.vector_store %arg10[%c0_19, %c0_20], %23 {strides = array<i32>} : memref<8x1xf32, #tpu.memory_space<vmem>>, vector<8x1xf32>,
    } else {
    }
    %c0 = arith.constant 0 : index
    %c0_1 = arith.constant 0 : index
    %c0_2 = arith.constant 0 : index
    %3 = vector.load %arg2[%c0, %c0_1, %c0_2] : memref<8x128x128xf32, #tpu.memory_space<vmem>>, vector<8x128x128xf32>
    %c0_3 = arith.constant 0 : index
    %c0_4 = arith.constant 0 : index
    %4 = vector.load %arg3[%c0_3, %c0_4] : memref<8x128xi32, #tpu.memory_space<vmem>>, vector<8x128xi32>
    %5 = arith.sitofp %4 : vector<8x128xi32> to vector<8x128xf32>
    %c0_5 = arith.constant 0 : index
    %c0_6 = arith.constant 0 : index
    %6 = vector.load %arg9[%c0_5, %c0_6] : memref<8x128xf32, #tpu.memory_space<vmem>>, vector<8x128xf32>
    %7 = vector.shape_cast %5 : vector<8x128xf32> to vector<8x128x1xf32>
    %8 = vector.broadcast %7 : vector<8x128x1xf32> to vector<8x128x128xf32>
    %9 = arith.mulf %3, %8 : vector<8x128x128xf32>
    %cst = arith.constant dense<0.000000e+00> : vector<8x128xf32>
    %10 = vector.multi_reduction <add>, %9, %cst [1] : vector<8x128x128xf32> to vector<8x128xf32>
    %11 = arith.addf %6, %10 : vector<8x128xf32>
    %c0_7 = arith.constant 0 : index
    %c0_8 = arith.constant 0 : index
    %12 = vector.load %arg9[%c0_7, %c0_8] : memref<8x128xf32, #tpu.memory_space<vmem>>, vector<8x128xf32>
    tpu.vector_store %arg9[%c0_7, %c0_8], %11 {strides = array<i32>} : memref<8x128xf32, #tpu.memory_space<vmem>>, vector<8x128xf32>,
    %c0_9 = arith.constant 0 : index
    %c0_10 = arith.constant 0 : index
    %13 = vector.load %arg10[%c0_9, %c0_10] : memref<8x1xf32, #tpu.memory_space<vmem>>, vector<8x1xf32>
    %cst_11 = arith.constant dense<0.000000e+00> : vector<8xf32>
    %14 = vector.multi_reduction <add>, %5, %cst_11 [1] : vector<8x128xf32> to vector<8xf32>
    %15 = vector.shape_cast %14 : vector<8xf32> to vector<8x1xf32>
    %16 = arith.addf %13, %15 : vector<8x1xf32>
    %c0_12 = arith.constant 0 : index
    %c0_13 = arith.constant 0 : index
    %17 = vector.load %arg10[%c0_12, %c0_13] : memref<8x1xf32, #tpu.memory_space<vmem>>, vector<8x1xf32>
    tpu.vector_store %arg10[%c0_12, %c0_13], %16 {strides = array<i32>} : memref<8x1xf32, #tpu.memory_space<vmem>>, vector<8x1xf32>,
    %c1_i32 = arith.constant 1 : i32
    %18 = arith.cmpi eq, %arg1, %c1_i32 : i32
    %19 = arith.extui %18 : i1 to i32
    %c0_i32_14 = arith.constant 0 : i32
    %20 = arith.cmpi ne, %19, %c0_i32_14 : i32
    scf.if %20 {
      %c0_15 = arith.constant 0 : index
      %c0_16 = arith.constant 0 : index
      %21 = vector.load %arg10[%c0_15, %c0_16] : memref<8x1xf32, #tpu.memory_space<vmem>>, vector<8x1xf32>
      %cst_17 = arith.constant 9.99999971E-10 : f32
      %22 = vector.broadcast %cst_17 : f32 to vector<8x1xf32>
      %23 = arith.maximumf %21, %22 : vector<8x1xf32>
      %c0_18 = arith.constant 0 : index
      %c0_19 = arith.constant 0 : index
      %24 = vector.load %arg9[%c0_18, %c0_19] : memref<8x128xf32, #tpu.memory_space<vmem>>, vector<8x128xf32>
      %25 = vector.broadcast %23 : vector<8x1xf32> to vector<8x128xf32>
      %26 = arith.divf %24, %25 : vector<8x128xf32>
      %cst_20 = arith.constant dense<0.000000e+00> : vector<8xf32>
      %27 = vector.multi_reduction <add>, %26, %cst_20 [1] : vector<8x128xf32> to vector<8xf32>
      %28 = vector.shape_cast %27 : vector<8xf32> to vector<8x1xf32>
      %cst_21 = arith.constant 1.280000e+02 : f32
      %29 = vector.broadcast %cst_21 : f32 to vector<8x1xf32>
      %30 = arith.divf %28, %29 : vector<8x1xf32>
      %31 = vector.broadcast %30 : vector<8x1xf32> to vector<8x128xf32>
      %32 = arith.subf %26, %31 : vector<8x128xf32>
      %33 = arith.mulf %32, %32 : vector<8x128xf32>
      %cst_22 = arith.constant dense<0.000000e+00> : vector<8xf32>
      %34 = vector.multi_reduction <add>, %33, %cst_22 [1] : vector<8x128xf32> to vector<8xf32>
      %35 = vector.shape_cast %34 : vector<8xf32> to vector<8x1xf32>
      %cst_23 = arith.constant 1.280000e+02 : f32
      %36 = vector.broadcast %cst_23 : f32 to vector<8x1xf32>
      %37 = arith.divf %35, %36 : vector<8x1xf32>
      %38 = vector.broadcast %30 : vector<8x1xf32> to vector<8x128xf32>
      %39 = arith.subf %26, %38 : vector<8x128xf32>
      %cst_24 = arith.constant 9.99999974E-6 : f32
      %40 = vector.broadcast %cst_24 : f32 to vector<8x1xf32>
      %41 = arith.addf %37, %40 : vector<8x1xf32>
      %42 = math.rsqrt %41 : vector<8x1xf32>
      %43 = vector.broadcast %42 : vector<8x1xf32> to vector<8x128xf32>
      %44 = arith.mulf %39, %43 : vector<8x128xf32>
      %c0_25 = arith.constant 0 : index
      %c0_26 = arith.constant 0 : index
      %45 = vector.load %arg4[%c0_25, %c0_26] : memref<1x128xf32, #tpu.memory_space<vmem>>, vector<1x128xf32>
      %46 = vector.broadcast %45 : vector<1x128xf32> to vector<8x128xf32>
      %47 = arith.mulf %44, %46 : vector<8x128xf32>
      %c0_27 = arith.constant 0 : index
      %c0_28 = arith.constant 0 : index
      %48 = vector.load %arg5[%c0_27, %c0_28] : memref<1x128xf32, #tpu.memory_space<vmem>>, vector<1x128xf32>
      %49 = vector.broadcast %48 : vector<1x128xf32> to vector<8x128xf32>
      %50 = arith.addf %47, %49 : vector<8x128xf32>
      %c0_29 = arith.constant 0 : index
      %c0_30 = arith.constant 0 : index
      %51 = vector.load %arg6[%c0_29, %c0_30] : memref<128x128xf32, #tpu.memory_space<vmem>>, vector<128x128xf32>
      %cst_31 = arith.constant dense<0.000000e+00> : vector<8x128xf32>
      %52 = tpu.matmul %50, %51, %cst_31 {dimension_numbers = #tpu.dot_dimension_numbers<[1], [0], [0], [1], [0, 0, 1, 1], [], []>} : vector<8x128xf32>, vector<128x128xf32>, vector<8x128xf32> -> vector<8x128xf32>
      %c0_32 = arith.constant 0 : index
      %c0_33 = arith.constant 0 : index
      %53 = vector.load %arg7[%c0_32, %c0_33] : memref<1x128xf32, #tpu.memory_space<vmem>>, vector<1x128xf32>
      %54 = vector.broadcast %53 : vector<1x128xf32> to vector<8x128xf32>
      %55 = arith.addf %52, %54 : vector<8x128xf32>
      %c0_34 = arith.constant 0 : index
      %c0_35 = arith.constant 0 : index
      %56 = vector.load %arg8[%c0_34, %c0_35] : memref<8x128xf32, #tpu.memory_space<vmem>>, vector<8x128xf32>
      tpu.vector_store %arg8[%c0_34, %c0_35], %55 {strides = array<i32>} : memref<8x128xf32, #tpu.memory_space<vmem>>, vector<8x128xf32>,
    } else {
    }
    return
  }
  func.func @transform_0(%arg0: i32, %arg1: i32) -> (i32, i32, i32) {
    %c0_i32 = arith.constant 0 : i32
    %c0_i32_0 = arith.constant 0 : i32
    return %arg0, %arg1, %c0_i32 : i32, i32, i32
  }
  func.func @transform_1(%arg0: i32, %arg1: i32) -> (i32, i32) {
    %c0_i32 = arith.constant 0 : i32
    return %arg0, %arg1 : i32, i32
  }
  func.func @transform_2(%arg0: i32, %arg1: i32) -> (i32, i32) {
    %c0_i32 = arith.constant 0 : i32
    %c0_i32_0 = arith.constant 0 : i32
    %c0_i32_1 = arith.constant 0 : i32
    return %c0_i32, %c0_i32_0 : i32, i32
  }
  func.func @transform_3(%arg0: i32, %arg1: i32) -> (i32, i32) {
    %c0_i32 = arith.constant 0 : i32
    %c0_i32_0 = arith.constant 0 : i32
    %c0_i32_1 = arith.constant 0 : i32
    return %c0_i32, %c0_i32_0 : i32, i32
  }
  func.func @transform_4(%arg0: i32, %arg1: i32) -> (i32, i32) {
    %c0_i32 = arith.constant 0 : i32
    %c0_i32_0 = arith.constant 0 : i32
    %c0_i32_1 = arith.constant 0 : i32
    return %c0_i32, %c0_i32_0 : i32, i32
  }
  func.func @transform_5(%arg0: i32, %arg1: i32) -> (i32, i32) {
    %c0_i32 = arith.constant 0 : i32
    %c0_i32_0 = arith.constant 0 : i32
    %c0_i32_1 = arith.constant 0 : i32
    return %c0_i32, %c0_i32_0 : i32, i32
  }
  func.func @transform_6(%arg0: i32, %arg1: i32) -> (i32, i32) {
    %c0_i32 = arith.constant 0 : i32
    %c0_i32_0 = arith.constant 0 : i32
    return %arg0, %c0_i32 : i32, i32
  }
}

</mosaic_0001>

<bundles_post_ra>
// kernel: tpu_custom_call.1
= control target key start
LH: loop header
LB: loop body
LE: loop exit
PB: predicated region body
PF: predicated region fallthrough
CT: control target
= control target key end

     0   :  { %s2884_s0 = inlined_call_operand.hbm [shape: f32[16,256,128], index: 0, kind: input, shape index: {}]   ;;  %s2885_s1 = inlined_call_operand.hbm [shape: s32[16,256], index: 1, kind: input, shape index: {}]   ;;  %s2886_s2 = inlined_call_operand.hbm [shape: f32[1,128], index: 2, kind: input, shape index: {}]   ;;  %s2887_s3 = inlined_call_operand.hbm [shape: f32[1,128], index: 3, kind: input, shape index: {}]   ;;  %s2888_s4 = inlined_call_operand.hbm [shape: f32[128,128], index: 4, kind: input, shape index: {}]   ;;  %s2889_s5 = inlined_call_operand.hbm [shape: f32[1,128], index: 5, kind: input, shape index: {}]   ;;  %s2890_s6 = inlined_call_operand.hbm [shape: f32[16,128], index: 6, kind: output, shape index: {}]  }
   0x1   :  { %2902 = sst [smem:[#allocation33_spill]] %s2884_s0 }
   0x2   :  { %2903 = sst [smem:[#allocation34_spill]] %s2886_s2 }
   0x3   :  { %2904 = sst [smem:[#allocation35_spill]] %s2887_s3 }
   0x4   :  { %2905 = sst [smem:[#allocation36_spill]] %s2888_s4 }
   0x5   :  { %2906 = sst [smem:[#allocation37_spill]] %s2889_s5 }
   0x6   :  { %2907 = sst [smem:[#allocation38_spill]] %s2890_s6 }
   0x7   :  { %11 = vsyncpa [#allocation5], 0 }
   0x8   :  { %13 = vsyncpa [#allocation5 + $0x1], 0 }
   0x9   :  { %14 = vsyncpa [#allocation8], 0 }
   0xa   :  { %16 = vsyncpa [#allocation8 + $0x1], 0 }
   0xb   :  { %17 = vsyncpa [#allocation11], 0 }
   0xc   :  { %18 = vsyncpa [#allocation14], 0 }
   0xd   :  { %19 = vsyncpa [#allocation6], 0 }
   0xe   :  { %21 = vsyncpa [#allocation6 + $0x1], 0  ;;  %s2278_s21 = smov 0   ;;  %s2280_s22 = smov 0  }
   0xf   :  { %s2282_s23 = smov 0   ;;  %s2284_s24 = smov 0  }
  0x10   :  { %s2286_s25 = smov 0   ;;  %s2288_s26 = smov 0  }
  0x11   :  { %s2290_s27 = smov 0   ;;  %s2292_s28 = smov 0  }
  0x12   :  { %s2294_s29 = smov 0   ;;  %s2296_s30 = smov 0  }
  0x13   :  { %s2298_s7 = smov 0  }
  0x14 LB: > { %2908 = sst [smem:[#allocation25_spill]] %s2183_s21  ;;  %s2332_s8 = sadd.s32 4294967295, %s2223_s7   ;;  %s2223_s7 = sphi %s2298_s7, %s27_s7   ;;  %s2219_s30 = sphi %s2296_s30, %s2953_s30   ;;  %s2215_s29 = sphi %s2294_s29, %s2952_s29   ;;  %s2211_s28 = sphi %s2292_s28, %s2951_s28   ;;  %s2207_s27 = sphi %s2290_s27, %s2950_s27   ;;  %s2203_s26 = sphi %s2288_s26, %s2943_s26   ;;  %s2199_s25 = sphi %s2286_s25, %s2949_s25   ;;  %s2195_s24 = sphi %s2284_s24, %s2948_s24   ;;  %s2191_s23 = sphi %s2282_s23, %s2941_s23   ;;  %s2187_s22 = sphi %s2280_s22, %s2947_s22   ;;  %s2183_s21 = sphi %s2278_s21, %s2946_s21  }
  0x15   : > { %2909 = sst [smem:[#allocation26_spill]] %s2191_s23  ;;  %s1706_s9 = sadd.s32 4294967294, %s2223_s7  }
  0x16   : > { %2910 = sst [smem:[#allocation27_spill]] %s2203_s26  ;;  %s36_s10 = sadd.s32 1, %s2215_s29 }
  0x17   : > { %s39_s11 = sadd.s32 1, %s2219_s30  ;;  %p37_p0 = scmp.ge.s32.totalorder %s36_s10, 2 }
  0x18   : > { %s48_s12 = sadd.s32 1, %s2203_s26  ;;  %p55_p1 = scmp.ne.s32.totalorder %s2203_s26, %s2199_s25 }
  0x19   : > { %p56_p2 = scmp.eq.s32.totalorder %s2223_s7, 0  ;;  %s2955_s10 = smov (%p37_p0, %s36_s10), 0 }
  0x1a   : > { %2911 = sst [smem:[#allocation28_spill]] %s2955_s10  ;;  %s2957_s11 = smov (!%p37_p0, %s39_s11), %s2219_s30 }
  0x1b   : > { %s44_s13 = ssub.s32 %s2215_s29, %s2955_s10  ;;  %p2346_p3 = por %p56_p2, %p55_p1 }
  0x1c   : > { %p41_p4 = scmp.ge.s32.totalorder %s2957_s11, 2  ;;  %p61_p5 = scmp.ne.s32.totalorder %s2199_s25, %s2195_s24 }
  0x1d   : > { %p2895_p6 = scmp.eq.s32.totalorder %s2332_s8, 0  ;;  %s186_s15 = sadd.s32 1, %s2191_s23 }
  0x1e   : > { %s2959_s11 = smov (%p41_p4, %s2957_s11), 0  ;;  %p196_p8 = scmp.ne.s32.totalorder %s2191_s23, %s2187_s22 }
  0x1f   : > { %2913 = sst [smem:[#allocation29_spill]] %s2959_s11  ;;  %p2357_p7 = por %p2895_p6, %p61_p5 }
  0x20   : > { %s43_s17 = ssub.s32 %s2219_s30, %s2959_s11  ;;  %p197_p9 = scmp.eq.s32.totalorder %s2332_s8, 3 }
  0x21   : > { %s2914_s16 = scalar_select %p2357_p7, 1, 0 }
  0x22   : > { %s45_s18 = sor.u32 %s44_s13, %s43_s17  ;;  %p184_p10 = scmp.eq.s32.totalorder %s43_s17, 0 }
  0x23   : > { %p46_p11 = scmp.eq.s32.totalorder %s45_s18, 0  ;;  %p2366_p12 = por %p197_p9, %p196_p8 }
  0x24   : > { %s2371_s20 = scalar_select %p184_p10, %s2191_s23, %s186_s15  }
  0x25   : > { %s2915_s19 = scalar_select %p2366_p12, 1, 0 }
  0x26   : > { %2916 = sst [smem:[#allocation30_spill]] %s2371_s20  ;;  %p202_p13 = scmp.ne.s32.totalorder %s2187_s22, %s2183_s21 }
  0x27   : > { %s2374_s24 = scalar_select %p46_p11, %s2203_s26, %s48_s12  }
  0x28   : > { %p203_p0 = scmp.eq.s32.totalorder %s1706_s9, 3  ;;  %p1707_p1 = scmp.ge.s32.totalorder %s2223_s7, 1 }
  0x29   : > { %2917 = sst [smem:[#allocation31_spill]] %s2374_s24  ;;  %p210_p2 = scmp.lt.s32.totalorder %s2223_s7, 5 }
  0x2a   : > { %p2380_p4 = por %p203_p0, %p202_p13  ;;  %s2225_s17 = smov [#allocation10]  }
  0x2b   : > { %p2384_p5 = pnand %p1707_p1, %p210_p2  ;;  %s234_s18 = sshll.u32 %s2225_s17, 4  ;;  %s235_s18 = int_to_ptr.vmem [resolvable:$true] %s234_s18 }
  0x2c   : > { %s2918_s10 = scalar_select %p2380_p4, 1, 0 }
  0x2d   : > { %s2920_s13 = scalar_select %p2384_p5, 1, 0 }
  0x2e   : > { %2919 = sst [smem:[#allocation32_spill]] %s2918_s10  ;;  %p1822_p8 = pneg %p2384_p5 }
  0x2f   : > { %s2226_s9 = smov [#allocation9]   ;;  %s1968_s11 = scalar_lea.vmem %s235_s18, 16 }
  0x30   : > { %p2392_p9 = pnand %p1822_p8, %p2895_p6  ;;  %s223_s15 = sshll.u32 %s2226_s9, 4  ;;  %s224_s15 = int_to_ptr.vmem [resolvable:$true] %s223_s15 }
  0x31   : > { %p1969_p11 = scmp.ne.s32.totalorder %s235_s18, %s1968_s11  ;;  %s1975_s17 = scalar_lea.vmem %s235_s18, 32 }
  0x32   : > { %p1959_p10 = pneg %p2392_p9  ;;  %p1976_p1 = scmp.lt.s32.totalorder %s235_s18, %s235_s18 }
  0x33   : > { %p1977_p2 = scmp.lt.s32.totalorder %s1975_s17, %s1968_s11 }
  0x34   : > { %p1971_p13 = pnand %p1969_p11, %p1959_p10 }
  0x35   : > { %p1978_p4 = por %p1977_p2, %p1976_p1 }
  0x36   : > { %p1972_p0 = pneg %p1971_p13 }
  0x38   : > { %p1979_p8 = pnand %p1978_p4, %p1972_p0 }
  0x3a   : > { %1982 = shalt.err (!%p1979_p8)
}
  0x3b   : > { %s2922_s3 = sld [smem:[#allocation35_spill]]  ;;  %s2227_s9 = smov [#allocation12]  }
  0x3c   : > { %s244_s23 = sshll.u32 %s2227_s9, 4  ;;  %s1994_s10 = scalar_lea.vmem %s224_s15, 16  ;;  %s245_s23 = int_to_ptr.vmem [resolvable:$true] %s244_s23 }
  0x3d   : > { %p1995_p6 = scmp.ne.s32.totalorder %s224_s15, %s1994_s10  ;;  %s2001_s11 = scalar_lea.vmem %s224_s15, 32 }
  0x3e   : > { %p2002_p1 = scmp.lt.s32.totalorder %s224_s15, %s224_s15  ;;  %p2003_p4 = scmp.lt.s32.totalorder %s2001_s11, %s1994_s10 }
  0x3f   : > { %p1997_p11 = pnand %p1995_p6, %p1959_p10 }
  0x40   : > { %p2004_p0 = por %p2003_p4, %p2002_p1 }
  0x41   : > { %1828 = dma.hbm_to_vmem [thread:$0]  (!%p2392_p9), %s2922_s3, 16, %s235_s18, [#allocation11]  }
  0x42   : > { %p1998_p13 = pneg %p1997_p11 }
  0x44   : > { %p2005_p2 = pnand %p2004_p0, %p1998_p13 }
  0x46   : > { %2008 = shalt.err (!%p2005_p2)
}
  0x47   : > { %s2923_s2 = sld [smem:[#allocation34_spill]]  ;;  %s2020_s18 = scalar_lea.vmem %s245_s23, 2048 }
  0x48   : > { %p2021_p8 = scmp.ne.s32.totalorder %s245_s23, %s2020_s18  ;;  %p2028_p12 = scmp.lt.s32.totalorder %s245_s23, %s245_s23 }
  0x49   : > { %p2029_p7 = scmp.lt.s32.totalorder %s2020_s18, %s2020_s18 }
  0x4a   : > { %p2023_p6 = pnand %p2021_p8, %p1959_p10 }
  0x4b   : > { %p2030_p5 = por %p2029_p7, %p2028_p12 }
  0x4c   : > { %p2024_p11 = pneg %p2023_p6 }
  0x4d   : > { %1825 = dma.hbm_to_vmem [thread:$0]  (!%p2392_p9), %s2923_s2, 16, %s224_s15, [#allocation8]  }
  0x4e   : > { %p2031_p1 = pnand %p2030_p5, %p2024_p11 }
  0x50   : > { %2034 = shalt.err (!%p2031_p1)
}
  0x51   : > { %s2228_s10 = smov 128   ;;  %s2229_s17 = smov 8  }
  0x52   : > { %s2924_s4 = sld [smem:[#allocation36_spill]]  ;;  %s2230_s15 = smov [#allocation13]  }
  0x53   : > { %s258_s20 = sshll.u32 %s2230_s15, 4  ;;  %s259_s20 = int_to_ptr.vmem [resolvable:$true] %s258_s20 }
  0x54   : > { %s2046_s24 = scalar_lea.vmem %s259_s20, 16  ;;  %s2053_s18 = scalar_lea.vmem %s259_s20, 32 }
  0x55   : > { %p2047_p13 = scmp.ne.s32.totalorder %s259_s20, %s2046_s24  ;;  %p2054_p12 = scmp.lt.s32.totalorder %s259_s20, %s259_s20 }
  0x56   : > { %p2055_p5 = scmp.lt.s32.totalorder %s2053_s18, %s2046_s24 }
  0x57   : > { %p2049_p4 = pnand %p2047_p13, %p1959_p10 }
  0x58   : > { %1831 = dma.hbm_to_vmem [thread:$0]  (!%p2392_p9), %s2924_s4, 2048, %s245_s23, [#allocation11], %s2228_s10, %s2228_s10, %s2229_s17  }
  0x59   : > { %p2050_p7 = pneg %p2049_p4  ;;  %p2056_p0 = por %p2055_p5, %p2054_p12 }
  0x5b   : > { %p2057_p2 = pnand %p2056_p0, %p2050_p7 }
  0x5d   : > { %2060 = shalt.err (!%p2057_p2)
}
  0x5e   : > { %s2925_s5 = sld [smem:[#allocation37_spill]]  ;;  %p1712_p8 = scmp.ge.s32.totalorder %s2223_s7, 4 }
  0x60   : > { %265 = sbr.rel (%p1712_p8) target bundleno = 133 (0x85), region = 32 }
  0x64   : > { %1834 = dma.hbm_to_vmem [thread:$0]  (!%p2392_p9), %s2925_s5, 16, %s259_s20, [#allocation14]  }
  0x65   : > { %s2432_s23 = sand.u32 1, %s2203_s26   ;;  %s1715_s10 = sshll.u32 %s2215_s29, 4 }
  0x66   : > { %s1713_s17 = sshll.u32 %s2432_s23, 10  ;;  %s1740_s12 = sshll.u32 %s2219_s30, 8 }
  0x67   : > { %s280_s11 = sadd.s32 %s1740_s12, %s1715_s10  ;;  %s273_s2 = scalar_lea.vmem [#allocation4], %s1713_s17 }
  0x68   : > { %s295_s15 = sshll.u32 %s273_s2, 4  ;;  %s1717_s20 = sshll.u32 %s280_s11, 7  ;;  %s296_s15 = int_to_ptr.vmem [resolvable:$true] %s295_s15 }
  0x69   : > { %s1801_s24 = scalar_select %p2346_p3, [#allocation0], [#allocation18] }
  0x6a   : > { %s2231_s18 = smov 4096   ;;  %s2232_s3 = smov 2048  }
  0x6b   : > { %1802 = sst [smem:[#allocation17]] (%p2346_p3), %s2231_s18  ;;  %s2233_s4 = smov 16  }
  0x6c   : > { %s287_s9 = sld [smem:[%s1801_s24]]   ;;  %s2234_s10 = smov 128  }
  0x6d   : > { %1803 = sst [smem:[#allocation17 + $0x1]] (%p2346_p3), %s2232_s3  ;;  %s2235_s2 = smov 8  }
  0x6e   : > { %1804 = sst [smem:[#allocation17 + $0x2]] (%p2346_p3), %s2233_s4  ;;  %s270_s5 = scalar_lea.sflag [#allocation5], %s2432_s23 }
  0x6f   : > { %1805 = sst [smem:[#allocation17 + $0x3]] (%p2346_p3), %s2234_s10  ;;  %s2236_s3 = smov 131072  }
  0x70   : > { %s2926_s0 = sld [smem:[#allocation33_spill]]  ;;  %s318_s4 = sand.u32 1, %s2223_s7  }
  0x71   : > { %1806 = sst [smem:[#allocation17 + $0x4]] (%p2346_p3), %s2234_s10  ;;  %s1720_s26 = sshll.u32 %s2432_s23, 3 }
  0x72   : > { %1807 = sst [smem:[#allocation17 + $0x5]] (%p2346_p3), %s2235_s2  ;;  %s1718_s24 = sshll.u32 %s287_s9, 26 }
  0x73   : > { %s1719_s18 = sadd.s32 134217728, %s1718_s24  ;;  %s1721_s17 = sshll.u32 %s2219_s30, 1 }
  0x74   : > { %s327_s10 = sadd.s32 %s2215_s29, %s1721_s17  ;;  %s319_s21 = scalar_lea.sflag [#allocation8], %s318_s4 }
  0x76   : > { %s282_s11 = scalar_lea.hbm %s2926_s0, %s1717_s20  ;;  %s322_s20 = scalar_lea.vmem [#allocation7], %s1720_s26 }
  0x77   : > { %1808 = dma.general (%p2346_p3), %s282_s11, 16384, %s296_s15, %s270_s5, %s2236_s3, [#allocation17], %s1719_s18, 0  }
  0x78   : > { %s331_s12 = sshll.u32 %s322_s20, 4  ;;  %s1722_s0 = sshll.u32 %s327_s10, 7  ;;  %s332_s12 = int_to_ptr.vmem [resolvable:$true] %s331_s12 }
  0x79   : > { %s329_s24 = scalar_lea.hbm %s2885_s1, %s1722_s0  ;;  %s2073_s6 = scalar_lea.vmem %s332_s12, 128 }
  0x7a   : > { %p2074_p9 = scmp.ne.s32.totalorder %s332_s12, %s2073_s6  ;;  %s2237_s5 = smov [#allocation7]  }
  0x7b   : > { %s2077_s15 = sshll.u32 %s2237_s5, 4  ;;  %s2078_s15 = int_to_ptr.vmem [resolvable:$false] %s2077_s15 }
  0x7c   : > { %p2075_p10 = pnand %p2074_p9, %p2346_p3  ;;  %s2079_s23 = scalar_lea.vmem %s2078_s15, 256 }
  0x7d   : > { %p2080_p11 = scmp.lt.s32.totalorder %s332_s12, %s2078_s15  ;;  %p2081_p1 = scmp.lt.s32.totalorder %s2079_s23, %s2073_s6 }
  0x7e   : > { %p2076_p6 = pneg %p2075_p10 }
  0x7f   : > { %p2082_p13 = por %p2081_p1, %p2080_p11 }
  0x81   : > { %p2083_p4 = pnand %p2082_p13, %p2076_p6 }
  0x83   : > { %2086 = shalt.err (!%p2083_p4)
}
  0x84   : > { %1809 = dma.hbm_to_vmem [thread:$0]  (%p2346_p3), %s329_s24, 128, %s332_s12, %s319_s21  }
  0x85 PF: > { %p2927_p7 = scmp.ne.s32.totalorder %s2920_s13, 0 }
  0x86   : > { %s342_s0 = sand.u32 (!%p2927_p7), 1, %s2199_s25   ;;  %p2928_p12 = scmp.ne.s32.totalorder (!%p2927_p7), %s2914_s16, 0 }
  0x87   : > { %340 = sbr.rel (%p2927_p7) target bundleno = 1270 (0x4f6), region = 44  ;;  %s1724_s26 = sshll.u32 (!%p2927_p7), %s342_s0, 10 }
  0x88   : > { %s343_s11 = scalar_lea.sflag (!%p2927_p7), [#allocation5], %s342_s0  ;;  %s2471_s18 = scalar_lea.vmem (!%p2927_p7), [#allocation4], %s1724_s26 }
  0x8c   : > { %2158 = dma.done.wait (%p2928_p12), %s343_s11, 16384  }
  0x8d   : > { %2160 = vsyncadd (%p2928_p12), %s343_s11, 4294950912  ;;  %s351_s6 = sand.u32 1, %s2332_s8   ;;  %s1725_s21 = sshll.u32 %s342_s0, 3 }
  0x8e   : > { %s352_s14 = scalar_lea.sflag [#allocation8], %s351_s6  ;;  %s355_s3 = scalar_lea.vmem [#allocation7], %s1725_s21 }
  0x8f   : > { %2162 = dma.done.wait (%p2928_p12), %s352_s14, 128  }
  0x90   : > { %2164 = vsyncadd (%p2928_p12), %s352_s14, 4294967168  ;;  %p2929_p3 = scmp.eq.s32.totalorder %s2332_s8, 0 }
  0x92   : > { %2166 = dma.done.wait (%p2929_p3), [#allocation8], 16   ;;  %p2930_p5 = pmov %p2929_p3 }
  0x93   : > { %p2931_p0 = pmov %p2929_p3 }
  0x94   : > { %2168 = vsyncadd (%p2930_p5), [#allocation8], 4294967280 }
  0x95   : > { %2170 = dma.done.wait (%p2931_p0), [#allocation11], 2064   ;;  %p2932_p2 = pmov %p2931_p0 }
  0x96   : > { %p2933_p8 = pmov %p2931_p0 }
  0x97   : > { %2172 = vsyncadd (%p2932_p2), [#allocation11], 4294965232 }
  0x98   : > { %2174 = dma.done.wait (%p2933_p8), [#allocation14], 16   ;;  %p2934_p9 = pmov %p2931_p0 }
  0x99   : > { %s402_s16 = sand.u32 1, %s2187_s22   ;;  %p1731_p10 = scmp.ne.s32.totalorder %s2207_s27, 0 }
  0x9a   : > { %2176 = vsyncadd (%p2934_p9), [#allocation14], 4294967280  ;;  %s2497_s13 = sshll.u32 %s402_s16, 3 }
  0x9b   : > { %s404_s4 = scalar_lea.vmem [#allocation15], %s2497_s13  ;;  %410 = sbr.rel (%p1731_p10) target bundleno = 162 (0xa2), region = 72 }
  0xa0   : > { %vm412_vm0 = vcmask 7168   ;;  %v2238_v0 = vmov 0.0  }
  0xa1   : > { %411 = vst [vmem:[#allocation2] sm:$0xff] %v2238_v0  ;;  %413 = vst.msk [vmem:[#allocation3] sm:$0xff] %vm412_vm0, %v2238_v0 }
  0xa2 PF: > { %v542_v1 = vld [vmem:[%s355_s3] sm:$0xff]  ;;  %v545_v2 = vlaneseq  ;;  %v416_v32 = vld [vmem:[%s2471_s18 + $0x10] sm:$0xff]  ;;  %v417_v38 = vld [vmem:[%s2471_s18 + $0x18] sm:$0xff]  ;;  %vm1385_vm1 = vcmask 1041409   ;;  %vm1387_vm2 = vcmask 1042434   ;;  %vm1389_vm3 = vcmask 1043459  }
  0xa3   : > { %v2501_v3 = vcvt.s32.f32 %v542_v1  ;;  %v415_v27 = vld [vmem:[%s2471_s18 + $0x8] sm:$0xff]  ;;  %v414_v28 = vld [vmem:[%s2471_s18] sm:$0xff]  ;;  %v433_v47 = vld [vmem:[%s2471_s18 + $0x98] sm:$0xff]  ;;  %vm1391_vm4 = vcmask 1044484   ;;  %vm1393_vm5 = vcmask 1045509   ;;  %vm1395_vm6 = vcmask 1046534  }
  0xa4   : > { %v2503_v4 = vshrl.u32 %v545_v2, 7  ;;  %v431_v39 = vld [vmem:[%s2471_s18 + $0x88] sm:$0xff]  ;;  %v430_v40 = vld [vmem:[%s2471_s18 + $0x80] sm:$0xff]  ;;  %v432_v48 = vld [vmem:[%s2471_s18 + $0x90] sm:$0xff]  ;;  %vm1397_vm7 = vcmask 1047559   ;;  %vm1406_vm8 = vcmask 7168  }
  0xa5   : > { %v418_v49 = vld [vmem:[%s2471_s18 + $0x20] sm:$0xff]  ;;  %v419_v53 = vld [vmem:[%s2471_s18 + $0x28] sm:$0xff]  ;;  %p1732_p6 = scmp.ne.s32.totalorder %s2207_s27, 1 }
  0xa6   : > { %v547_v5 = vsub.s32 0, %v2503_v4  ;;  %v614_v7 = vsub.s32 1, %v2503_v4  ;;  %v681_v9 = vsub.s32 2, %v2503_v4  ;;  %v748_v11 = vsub.s32 3, %v2503_v4  ;;  %v435_v58 = vld [vmem:[%s2471_s18 + $0xa8] sm:$0xff]  ;;  %v434_v59 = vld [vmem:[%s2471_s18 + $0xa0] sm:$0xff] }
  0xa7   : > { %v815_v17 = vsub.s32 4, %v2503_v4  ;;  %v882_v60 = vsub.s32 5, %v2503_v4 }
  0xa8   : > { %v548_v6 = vrot.slane %v2501_v3, %v547_v5  ;;  %v615_v8 = vrot.slane %v2501_v3, %v614_v7  ;;  %v682_v10 = vrot.slane %v2501_v3, %v681_v9  ;;  %v749_v12 = vrot.slane %v2501_v3, %v748_v11  ;;  %v436_v7 = vld [vmem:[%s2471_s18 + $0xb0] sm:$0xff] }
  0xa9   : > { %v2515_v20 = vrot.slane %v2501_v3, %v815_v17  ;;  %v949_v9 = vsub.s32 6, %v2503_v4 }
  0xaa   : > { %558 = vbcast.lane.b32.xlu1 %v548_v6, 272  ;;  %550 = vbcast.lane.b32.xlu0 %v548_v6, 256 }
  0xae   : > { %562 = vbcast.lane.b32.xlu1 %v548_v6, 280  ;;  %554 = vbcast.lane.b32.xlu0 %v548_v6, 264 }
  0xb2   : > { %570 = vbcast.lane.b32.xlu1 %v548_v6, 296  ;;  %566 = vbcast.lane.b32.xlu0 %v548_v6, 288 }
  0xb6   : > { %578 = vbcast.lane.b32.xlu1 %v548_v6, 312  ;;  %574 = vbcast.lane.b32.xlu0 %v548_v6, 304 }
  0xba   : > { %586 = vbcast.lane.b32.xlu1 %v548_v6, 328  ;;  %582 = vbcast.lane.b32.xlu0 %v548_v6, 320 }
  0xbe   : > { %594 = vbcast.lane.b32.xlu1 %v548_v6, 344  ;;  %590 = vbcast.lane.b32.xlu0 %v548_v6, 336 }
  0xc2   : > { %602 = vbcast.lane.b32.xlu1 %v548_v6, 360  ;;  %598 = vbcast.lane.b32.xlu0 %v548_v6, 352 }
  0xc6   : > { %610 = vbcast.lane.b32.xlu1 %v548_v6, 376  ;;  %606 = vbcast.lane.b32.xlu0 %v548_v6, 368 }
  0xca   : > { %621 = vbcast.lane.b32.xlu1 %v615_v8, 264  ;;  %617 = vbcast.lane.b32.xlu0 %v615_v8, 256 }
  0xce   : > { %629 = vbcast.lane.b32.xlu1 %v615_v8, 280  ;;  %625 = vbcast.lane.b32.xlu0 %v615_v8, 272 }
  0xd2   : > { %637 = vbcast.lane.b32.xlu1 %v615_v8, 296  ;;  %633 = vbcast.lane.b32.xlu0 %v615_v8, 288 }
  0xd6   : > { %645 = vbcast.lane.b32.xlu1 %v615_v8, 312  ;;  %641 = vbcast.lane.b32.xlu0 %v615_v8, 304 }
  0xda   : > { %653 = vbcast.lane.b32.xlu1 %v615_v8, 328  ;;  %649 = vbcast.lane.b32.xlu0 %v615_v8, 320 }
  0xde   : > { %661 = vbcast.lane.b32.xlu1 %v615_v8, 344  ;;  %657 = vbcast.lane.b32.xlu0 %v615_v8, 336 }
  0xe2   : > { %669 = vbcast.lane.b32.xlu1 %v615_v8, 360  ;;  %665 = vbcast.lane.b32.xlu0 %v615_v8, 352 }
  0xe6   : > { %677 = vbcast.lane.b32.xlu1 %v615_v8, 376  ;;  %673 = vbcast.lane.b32.xlu0 %v615_v8, 368  ;;  %v2568_v8 = vrot.slane %v2501_v3, %v882_v60 }
  0xea   : > { %688 = vbcast.lane.b32.xlu1 %v682_v10, 264  ;;  %684 = vbcast.lane.b32.xlu0 %v682_v10, 256 }
  0xee   : > { %696 = vbcast.lane.b32.xlu1 %v682_v10, 280  ;;  %692 = vbcast.lane.b32.xlu0 %v682_v10, 272 }
  0xf2   : > { %704 = vbcast.lane.b32.xlu1 %v682_v10, 296  ;;  %700 = vbcast.lane.b32.xlu0 %v682_v10, 288 }
  0xf6   : > { %712 = vbcast.lane.b32.xlu1 %v682_v10, 312  ;;  %708 = vbcast.lane.b32.xlu0 %v682_v10, 304 }
  0xfa   : > { %720 = vbcast.lane.b32.xlu1 %v682_v10, 328  ;;  %716 = vbcast.lane.b32.xlu0 %v682_v10, 320 }
  0xfe   : > { %728 = vbcast.lane.b32.xlu1 %v682_v10, 344  ;;  %724 = vbcast.lane.b32.xlu0 %v682_v10, 336 }
 0x102   : > { %736 = vbcast.lane.b32.xlu1 %v682_v10, 360  ;;  %732 = vbcast.lane.b32.xlu0 %v682_v10, 352 }
 0x106   : > { %744 = vbcast.lane.b32.xlu1 %v682_v10, 376  ;;  %740 = vbcast.lane.b32.xlu0 %v682_v10, 368  ;;  %v420_v10 = vld [vmem:[%s2471_s18 + $0x30] sm:$0xff] }
 0x10a   : > { %755 = vbcast.lane.b32.xlu1 %v749_v12, 264  ;;  %751 = vbcast.lane.b32.xlu0 %v749_v12, 256 }
 0x10e   : > { %763 = vbcast.lane.b32.xlu1 %v749_v12, 280  ;;  %759 = vbcast.lane.b32.xlu0 %v749_v12, 272 }
 0x112   : > { %771 = vbcast.lane.b32.xlu1 %v749_v12, 296  ;;  %767 = vbcast.lane.b32.xlu0 %v749_v12, 288 }
 0x116   : > { %779 = vbcast.lane.b32.xlu1 %v749_v12, 312  ;;  %775 = vbcast.lane.b32.xlu0 %v749_v12, 304 }
 0x11a   : > { %787 = vbcast.lane.b32.xlu1 %v749_v12, 328  ;;  %783 = vbcast.lane.b32.xlu0 %v749_v12, 320 }
 0x11c   : > { %v559_v13 = vpop.permute.xlu1 %558  ;;  %v551_v14 = vpop.permute.xlu0 %550 }
 0x11d   : > { %v1081_v33 = vmul.f32 %v551_v14, %v414_v28  ;;  %v1083_v34 = vmul.f32 %v559_v13, %v416_v32  ;;  %v1016_v28 = vsub.s32 7, %v2503_v4  ;;  %v438_v32 = vld [vmem:[%s2471_s18 + $0xc0] sm:$0xff]  ;;  %v439_v4 = vld [vmem:[%s2471_s18 + $0xc8] sm:$0xff] }
 0x11e   : > { %795 = vbcast.lane.b32.xlu1 %v749_v12, 344  ;;  %791 = vbcast.lane.b32.xlu0 %v749_v12, 336 }
 0x120   : > { %v563_v15 = vpop.permute.xlu1 %562  ;;  %v555_v16 = vpop.permute.xlu0 %554 }
 0x121   : > { %v1082_v29 = vmul.f32 %v555_v16, %v415_v27  ;;  %v1084_v41 = vmul.f32 %v563_v15, %v417_v38  ;;  %v421_v16 = vld [vmem:[%s2471_s18 + $0x38] sm:$0xff] }
 0x122   : > { %803 = vbcast.lane.b32.xlu1 %v749_v12, 360  ;;  %799 = vbcast.lane.b32.xlu0 %v749_v12, 352 }
 0x123   : > { %v1209_v35 = vadd.f32 %v1082_v29, %v1081_v33 }
 0x124   : > { %v571_v18 = vpop.permute.xlu1 %570  ;;  %v567_v19 = vpop.permute.xlu0 %566 }
 0x125   : > { %v1210_v42 = vadd.f32 %v1209_v35, %v1083_v34  ;;  %v1085_v57 = vmul.f32 %v567_v19, %v418_v49  ;;  %v1086_v62 = vmul.f32 %v571_v18, %v419_v53 }
 0x126   : > { %811 = vbcast.lane.b32.xlu1 %v749_v12, 376  ;;  %807 = vbcast.lane.b32.xlu0 %v749_v12, 368  ;;  %v437_v12 = vld [vmem:[%s2471_s18 + $0xb8] sm:$0xff] }
 0x127   : > { %v1211_v50 = vadd.f32 %v1210_v42, %v1084_v41  ;;  %v422_v41 = vld [vmem:[%s2471_s18 + $0x40] sm:$0xff] }
 0x128   : > { %v2517_v21 = vpop.permute.xlu1 %578  ;;  %v2519_v22 = vpop.permute.xlu0 %574 }
 0x129   : > { %v1212_v63 = vadd.f32 %v1211_v50, %v1085_v57  ;;  %v1087_v19 = vmul.f32 %v2519_v22, %v420_v10  ;;  %v1088_v33 = vmul.f32 %v2517_v21, %v421_v16  ;;  %v423_v21 = vld [vmem:[%s2471_s18 + $0x48] sm:$0xff] }
 0x12a   : > { %822 = vbcast.lane.b32.xlu1 %v2515_v20, 264  ;;  %818 = vbcast.lane.b32.xlu0 %v2515_v20, 256 }
 0x12b   : > { %v1213_v13 = vadd.f32 %v1212_v63, %v1086_v62  ;;  %v447_v62 = vld [vmem:[%s2471_s18 + $0x108] sm:$0xff]  ;;  %v446_v63 = vld [vmem:[%s2471_s18 + $0x100] sm:$0xff] }
 0x12c   : > { %v2523_v23 = vpop.permute.xlu1 %586  ;;  %v2525_v24 = vpop.permute.xlu0 %582 }
 0x12d   : > { %v1214_v34 = vadd.f32 %v1213_v13, %v1087_v19  ;;  %v1090_v49 = vmul.f32 %v2523_v23, %v423_v21  ;;  %v426_v13 = vld [vmem:[%s2471_s18 + $0x60] sm:$0xff] }
 0x12e   : > { %830 = vbcast.lane.b32.xlu1 %v2515_v20, 280  ;;  %826 = vbcast.lane.b32.xlu0 %v2515_v20, 272 }
 0x12f   : > { %v1215_v42 = vadd.f32 %v1214_v34, %v1088_v33  ;;  %v451_v33 = vld [vmem:[%s2471_s18 + $0x128] sm:$0xff]  ;;  %v450_v34 = vld [vmem:[%s2471_s18 + $0x120] sm:$0xff] }
 0x130   : > { %v2529_v25 = vpop.permute.xlu1 %594  ;;  %v2531_v26 = vpop.permute.xlu0 %590 }
 0x132   : > { %838 = vbcast.lane.b32.xlu1 %v2515_v20, 296  ;;  %834 = vbcast.lane.b32.xlu0 %v2515_v20, 288 }
 0x134   : > { %v2537_v30 = vpop.permute.xlu1 %602  ;;  %v2539_v31 = vpop.permute.xlu0 %598 }
 0x136   : > { %846 = vbcast.lane.b32.xlu1 %v2515_v20, 312  ;;  %842 = vbcast.lane.b32.xlu0 %v2515_v20, 304 }
 0x138   : > { %v2544_v36 = vpop.permute.xlu1 %610  ;;  %v2546_v37 = vpop.permute.xlu0 %606 }
 0x13a   : > { %854 = vbcast.lane.b32.xlu1 %v2515_v20, 328  ;;  %850 = vbcast.lane.b32.xlu0 %v2515_v20, 320 }
 0x13c   : > { %v622_v43 = vpop.permute.xlu1 %621  ;;  %v618_v44 = vpop.permute.xlu0 %617 }
 0x13d   : > { %v1098_v45 = vmul.f32 %v622_v43, %v431_v39  ;;  %v1097_v46 = vmul.f32 %v618_v44, %v430_v40  ;;  %v2586_v40 = vrot.slane %v2501_v3, %v1016_v28  ;;  %v1093_v28 = vmul.f32 %v2539_v31, %v426_v13 }
 0x13e   : > { %862 = vbcast.lane.b32.xlu1 %v2515_v20, 344  ;;  %858 = vbcast.lane.b32.xlu0 %v2515_v20, 336 }
 0x13f   : > { %v1230_v54 = vadd.f32 %v1098_v45, %v1097_v46  ;;  %v1089_v45 = vmul.f32 %v2525_v24, %v422_v41  ;;  %v424_v24 = vld [vmem:[%s2471_s18 + $0x50] sm:$0xff] }
 0x140   : > { %v630_v51 = vpop.permute.xlu1 %629  ;;  %v626_v52 = vpop.permute.xlu0 %625  ;;  %v1091_v23 = vmul.f32 %v2531_v26, %v424_v24 }
 0x141   : > { %v1100_v55 = vmul.f32 %v630_v51, %v433_v47  ;;  %v1099_v56 = vmul.f32 %v626_v52, %v432_v48  ;;  %v440_v48 = vld [vmem:[%s2471_s18 + $0xd0] sm:$0xff]  ;;  %v1216_v50 = vadd.f32 %v1215_v42, %v1089_v45  ;;  %v453_v45 = vld [vmem:[%s2471_s18 + $0x138] sm:$0xff] }
 0x142   : > { %870 = vbcast.lane.b32.xlu1 %v2515_v20, 360  ;;  %866 = vbcast.lane.b32.xlu0 %v2515_v20, 352 }
 0x143   : > { %v1231_v61 = vadd.f32 %v1230_v54, %v1099_v56  ;;  %v1217_v56 = vadd.f32 %v1216_v50, %v1090_v49 }
 0x144   : > { %v638_v0 = vpop.permute.xlu1 %637  ;;  %v634_v1 = vpop.permute.xlu0 %633 }
 0x145   : > { %v1102_v2 = vmul.f32 %v638_v0, %v435_v58  ;;  %v1101_v5 = vmul.f32 %v634_v1, %v434_v59  ;;  %v1232_v6 = vadd.f32 %v1231_v61, %v1100_v55  ;;  %v441_v55 = vld [vmem:[%s2471_s18 + $0xd8] sm:$0xff]  ;;  %v442_v0 = vld [vmem:[%s2471_s18 + $0xe0] sm:$0xff] }
 0x146   : > { %878 = vbcast.lane.b32.xlu1 %v2515_v20, 376  ;;  %874 = vbcast.lane.b32.xlu0 %v2515_v20, 368  ;;  %v2578_v20 = vrot.slane %v2501_v3, %v949_v9  ;;  %v425_v59 = vld [vmem:[%s2471_s18 + $0x58] sm:$0xff] }
 0x147   : > { %v1233_v11 = vadd.f32 %v1232_v6, %v1101_v5  ;;  %v1092_v1 = vmul.f32 %v2529_v25, %v425_v59  ;;  %v455_v59 = vld [vmem:[%s2471_s18 + $0x148] sm:$0xff] }
 0x148   : > { %v646_v14 = vpop.permute.xlu1 %645  ;;  %v642_v15 = vpop.permute.xlu0 %641 }
 0x149   : > { %v1103_v17 = vmul.f32 %v642_v15, %v436_v7  ;;  %v1234_v18 = vadd.f32 %v1233_v11, %v1102_v2  ;;  %v1104_v27 = vmul.f32 %v646_v14, %v437_v12  ;;  %v1218_v2 = vadd.f32 %v1217_v56, %v1091_v23  ;;  %v449_v11 = vld [vmem:[%s2471_s18 + $0x118] sm:$0xff]  ;;  %v448_v12 = vld [vmem:[%s2471_s18 + $0x110] sm:$0xff]  ;;  %v443_v14 = vld [vmem:[%s2471_s18 + $0xe8] sm:$0xff] }
 0x14a   : > { %889 = vbcast.lane.b32.xlu1 %v2568_v8, 264  ;;  %885 = vbcast.lane.b32.xlu0 %v2568_v8, 256  ;;  %v454_v23 = vld [vmem:[%s2471_s18 + $0x140] sm:$0xff] }
 0x14b   : > { %v1235_v29 = vadd.f32 %v1234_v18, %v1103_v17  ;;  %v1219_v15 = vadd.f32 %v1218_v2, %v1092_v1  ;;  %v427_v18 = vld [vmem:[%s2471_s18 + $0x68] sm:$0xff] }
 0x14c   : > { %v654_v35 = vpop.permute.xlu1 %653  ;;  %v650_v22 = vpop.permute.xlu0 %649 }
 0x14d   : > { %v1105_v38 = vmul.f32 %v650_v22, %v438_v32  ;;  %v1236_v39 = vadd.f32 %v1235_v29, %v1104_v27  ;;  %v1106_v46 = vmul.f32 %v654_v35, %v439_v4  ;;  %v444_v35 = vld [vmem:[%s2471_s18 + $0xf0] sm:$0xff] }
 0x14e   : > { %952 = vbcast.lane.b32.xlu1 %v2578_v20, 256  ;;  %893 = vbcast.lane.b32.xlu0 %v2568_v8, 272 }
 0x14f   : > { %v1237_v47 = vadd.f32 %v1236_v39, %v1105_v38  ;;  %v1094_v38 = vmul.f32 %v2537_v30, %v427_v18  ;;  %v1220_v39 = vadd.f32 %v1219_v15, %v1093_v28 }
 0x150   : > { %v662_v43 = vpop.permute.xlu1 %661  ;;  %v658_v44 = vpop.permute.xlu0 %657 }
 0x151   : > { %v1107_v53 = vmul.f32 %v658_v44, %v440_v48  ;;  %v1238_v54 = vadd.f32 %v1237_v47, %v1106_v46  ;;  %v1108_v60 = vmul.f32 %v662_v43, %v441_v55  ;;  %v452_v46 = vld [vmem:[%s2471_s18 + $0x130] sm:$0xff]  ;;  %v445_v48 = vld [vmem:[%s2471_s18 + $0xf8] sm:$0xff]  ;;  %v1221_v49 = vadd.f32 %v1220_v39, %v1094_v38 }
 0x152   : > { %1019 = vbcast.lane.b32.xlu1 %v2586_v40, 256  ;;  %956 = vbcast.lane.b32.xlu0 %v2578_v20, 264  ;;  %v428_v47 = vld [vmem:[%s2471_s18 + $0x70] sm:$0xff] }
 0x153   : > { %v1239_v61 = vadd.f32 %v1238_v54, %v1107_v53  ;;  %v1095_v55 = vmul.f32 %v2546_v37, %v428_v47 }
 0x154   : > { %v670_v51 = vpop.permute.xlu1 %669  ;;  %v666_v52 = vpop.permute.xlu0 %665 }
 0x155   : > { %v1109_v9 = vmul.f32 %v666_v52, %v442_v0  ;;  %v1240_v10 = vadd.f32 %v1239_v61, %v1108_v60  ;;  %v1110_v29 = vmul.f32 %v670_v51, %v443_v14  ;;  %v429_v52 = vld [vmem:[%s2471_s18 + $0x78] sm:$0xff]  ;;  %v459_v14 = vld [vmem:[%s2471_s18 + $0x168] sm:$0xff] }
 0x156   : > { %960 = vbcast.lane.b32.xlu1 %v2578_v20, 272  ;;  %1023 = vbcast.lane.b32.xlu0 %v2586_v40, 264  ;;  %v1096_v61 = vmul.f32 %v2544_v36, %v429_v52 }
 0x157   : > { %v1241_v32 = vadd.f32 %v1240_v10, %v1109_v9 }
 0x158   : > { %v2600_v57 = vpop.permute.xlu1 %677  ;;  %v674_v58 = vpop.permute.xlu0 %673 }
 0x159   : > { %v1111_v44 = vmul.f32 %v674_v58, %v444_v35  ;;  %v1242_v21 = vadd.f32 %v1241_v32, %v1110_v29  ;;  %v1112_v56 = vmul.f32 %v2600_v57, %v445_v48  ;;  %v461_v32 = vld [vmem:[%s2471_s18 + $0x178] sm:$0xff] }
 0x15a   : > { %1027 = vbcast.lane.b32.xlu1 %v2586_v40, 272  ;;  %897 = vbcast.lane.b32.xlu0 %v2568_v8, 280 }
 0x15b   : > { %v1243_v58 = vadd.f32 %v1242_v21, %v1111_v44 }
 0x15c   : > { %v689_v5 = vpop.permute.xlu1 %688  ;;  %v685_v6 = vpop.permute.xlu0 %684 }
 0x15d   : > { %v1114_v26 = vmul.f32 %v689_v5, %v447_v62  ;;  %v1113_v7 = vmul.f32 %v685_v6, %v446_v63  ;;  %v1222_v62 = vadd.f32 %v1221_v49, %v1095_v55  ;;  %v1244_v57 = vadd.f32 %v1243_v58, %v1112_v56  ;;  %v457_v5 = vld [vmem:[%s2471_s18 + $0x158] sm:$0xff]  ;;  %v456_v6 = vld [vmem:[%s2471_s18 + $0x150] sm:$0xff] }
 0x15e   : > { %901 = vbcast.lane.b32.xlu1 %v2568_v8, 288  ;;  %964 = vbcast.lane.b32.xlu0 %v2578_v20, 280 }
 0x15f   : > { %v1251_v25 = vadd.f32 %v1114_v26, %v1113_v7  ;;  %v1223_v7 = vadd.f32 %v1222_v62, %v1096_v61  ;;  %v1245_v13 = vrot.slane %v1244_v57, 4  ;;  %v466_v61 = vld [vmem:[%s2471_s18 + $0x1a0] sm:$0xff] }
 0x160   : > { %v697_v16 = vpop.permute.xlu1 %696  ;;  %v693_v17 = vpop.permute.xlu0 %692 }
 0x161   : > { %v1116_v19 = vmul.f32 %v697_v16, %v449_v11  ;;  %v1115_v27 = vmul.f32 %v693_v17, %v448_v12  ;;  %v1224_v16 = vrot.slane %v1223_v7, 4  ;;  %v1246_v29 = vadd.f32 %v1245_v13, %v1244_v57 }
 0x162   : > { %968 = vbcast.lane.b32.xlu1 %v2578_v20, 288  ;;  %1031 = vbcast.lane.b32.xlu0 %v2586_v40, 280 }
 0x163   : > { %v1252_v22 = vadd.f32 %v1251_v25, %v1115_v27  ;;  %v458_v25 = vld [vmem:[%s2471_s18 + $0x160] sm:$0xff]  ;;  %v1225_v35 = vadd.f32 %v1224_v16, %v1223_v7  ;;  %v469_v7 = vld [vmem:[%s2471_s18 + $0x1b8] sm:$0xff] }
 0x164   : > { %v705_v41 = vpop.permute.xlu1 %704  ;;  %v701_v4 = vpop.permute.xlu0 %700 }
 0x165   : > { %v1118_v31 = vmul.f32 %v705_v41, %v451_v33  ;;  %v1117_v42 = vmul.f32 %v701_v4, %v450_v34  ;;  %v1253_v43 = vadd.f32 %v1252_v22, %v1116_v19  ;;  %v460_v33 = vld [vmem:[%s2471_s18 + $0x170] sm:$0xff]  ;;  %v1226_v21 = vrot.slane %v1225_v35, 2 }
 0x166   : > { %1035 = vbcast.lane.b32.xlu1 %v2586_v40, 288  ;;  %905 = vbcast.lane.b32.xlu0 %v2568_v8, 296 }
 0x167   : > { %v1254_v30 = vadd.f32 %v1253_v43, %v1117_v42  ;;  %v463_v42 = vld [vmem:[%s2471_s18 + $0x188] sm:$0xff]  ;;  %v462_v43 = vld [vmem:[%s2471_s18 + $0x180] sm:$0xff] }
 0x168   : > { %v713_v50 = vpop.permute.xlu1 %712  ;;  %v709_v51 = vpop.permute.xlu0 %708 }
 0x169   : > { %v1120_v53 = vmul.f32 %v713_v50, %v453_v45  ;;  %v1119_v54 = vmul.f32 %v709_v51, %v452_v46  ;;  %v1255_v24 = vadd.f32 %v1254_v30, %v1118_v31  ;;  %v1247_v31 = vrot.slane %v1246_v29, 2  ;;  %v465_v50 = vld [vmem:[%s2471_s18 + $0x198] sm:$0xff]  ;;  %v464_v51 = vld [vmem:[%s2471_s18 + $0x190] sm:$0xff] }
 0x16a   : > { %909 = vbcast.lane.b32.xlu1 %v2568_v8, 304  ;;  %972 = vbcast.lane.b32.xlu0 %v2578_v20, 296 }
 0x16b   : > { %v1256_v60 = vadd.f32 %v1255_v24, %v1119_v54  ;;  %v1248_v49 = vadd.f32 %v1247_v31, %v1246_v29  ;;  %v1227_v54 = vadd.f32 %v1226_v21, %v1225_v35  ;;  %v474_v21 = vld [vmem:[%s2471_s18 + $0x1e0] sm:$0xff] }
 0x16c   : > { %v721_v63 = vpop.permute.xlu1 %720  ;;  %v717_v0 = vpop.permute.xlu0 %716 }
 0x16d   : > { %v1122_v1 = vmul.f32 %v721_v63, %v455_v59  ;;  %v1121_v2 = vmul.f32 %v717_v0, %v454_v23  ;;  %v1257_v37 = vadd.f32 %v1256_v60, %v1120_v53  ;;  %v1249_v23 = vrot.slane %v1248_v49, 1  ;;  %v467_v60 = vld [vmem:[%s2471_s18 + $0x1a8] sm:$0xff] }
 0x16e   : > { %976 = vbcast.lane.b32.xlu1 %v2578_v20, 304  ;;  %1039 = vbcast.lane.b32.xlu0 %v2586_v40, 296  ;;  %v1228_v0 = vrot.slane %v1227_v54, 1 }
 0x16f   : > { %v1258_v26 = vadd.f32 %v1257_v37, %v1121_v2 }
 0x170   : > { %v729_v9 = vpop.permute.xlu1 %728  ;;  %v725_v10 = vpop.permute.xlu0 %724 }
 0x171   : > { %v1124_v36 = vmul.f32 %v729_v9, %v457_v5  ;;  %v1123_v11 = vmul.f32 %v725_v10, %v456_v6  ;;  %v1259_v12 = vadd.f32 %v1258_v26, %v1122_v1  ;;  %v1250_v26 = vadd.f32 %v1249_v23, %v1248_v49  ;;  %v468_v9 = vld [vmem:[%s2471_s18 + $0x1b0] sm:$0xff] }
 0x172   : > { %1043 = vbcast.lane.b32.xlu1 %v2586_v40, 304  ;;  %913 = vbcast.lane.b32.xlu0 %v2568_v8, 312 }
 0x173   : > { %v1260_v15 = vadd.f32 %v1259_v12, %v1123_v11  ;;  %v1229_v11 = vadd.f32 %v1228_v0, %v1227_v54 }
 0x174   : > { %v737_v17 = vpop.permute.xlu1 %736  ;;  %v733_v18 = vpop.permute.xlu0 %732 }
 0x175   : > { %v1126_v19 = vmul.f32 %v737_v17, %v459_v14  ;;  %v1125_v27 = vmul.f32 %v733_v18, %v458_v25  ;;  %v1261_v28 = vadd.f32 %v1260_v15, %v1124_v36  ;;  %v1386_v17 = vsel %vm1385_vm1, %v1250_v26, %v1229_v11  ;;  %v471_v18 = vld [vmem:[%s2471_s18 + $0x1c8] sm:$0xff] }
 0x176   : > { %917 = vbcast.lane.b32.xlu1 %v2568_v8, 320  ;;  %980 = vbcast.lane.b32.xlu0 %v2578_v20, 312 }
 0x177   : > { %v1262_v34 = vadd.f32 %v1261_v28, %v1125_v27 }
 0x178   : > { %v745_v22 = vpop.permute.xlu1 %744  ;;  %v741_v38 = vpop.permute.xlu0 %740 }
 0x179   : > { %v1128_v39 = vmul.f32 %v745_v22, %v461_v32  ;;  %v1127_v41 = vmul.f32 %v741_v38, %v460_v33  ;;  %v1263_v4 = vadd.f32 %v1262_v34, %v1126_v19  ;;  %v470_v19 = vld [vmem:[%s2471_s18 + $0x1c0] sm:$0xff]  ;;  %v473_v22 = vld [vmem:[%s2471_s18 + $0x1d8] sm:$0xff]  ;;  %v472_v38 = vld [vmem:[%s2471_s18 + $0x1d0] sm:$0xff] }
 0x17a   : > { %984 = vbcast.lane.b32.xlu1 %v2578_v20, 320  ;;  %1047 = vbcast.lane.b32.xlu0 %v2586_v40, 312 }
 0x17b   : > { %v1264_v44 = vadd.f32 %v1263_v4, %v1127_v41 }
 0x17c   : > { %v756_v45 = vpop.permute.xlu1 %755  ;;  %v752_v46 = vpop.permute.xlu0 %751 }
 0x17d   : > { %v1265_v47 = vadd.f32 %v1264_v44, %v1128_v39  ;;  %v1130_v48 = vmul.f32 %v756_v45, %v463_v42  ;;  %v1129_v30 = vmul.f32 %v752_v46, %v462_v43  ;;  %v475_v44 = vld [vmem:[%s2471_s18 + $0x1e8] sm:$0xff] }
 0x17e   : > { %1051 = vbcast.lane.b32.xlu1 %v2586_v40, 320  ;;  %921 = vbcast.lane.b32.xlu0 %v2568_v8, 328 }
 0x17f   : > { %v1266_v52 = vrot.slane %v1265_v47, 4  ;;  %v1272_v53 = vadd.f32 %v1130_v48, %v1129_v30 }
 0x180   : > { %v764_v24 = vpop.permute.xlu1 %763  ;;  %v760_v55 = vpop.permute.xlu0 %759 }
 0x181   : > { %v1267_v56 = vadd.f32 %v1266_v52, %v1265_v47  ;;  %v1132_v58 = vmul.f32 %v764_v24, %v465_v50  ;;  %v1131_v59 = vmul.f32 %v760_v55, %v464_v51  ;;  %v477_v50 = vld [vmem:[%s2471_s18 + $0x1f8] sm:$0xff]  ;;  %v476_v51 = vld [vmem:[%s2471_s18 + $0x1f0] sm:$0xff] }
 0x182   : > { %925 = vbcast.lane.b32.xlu1 %v2568_v8, 336  ;;  %988 = vbcast.lane.b32.xlu0 %v2578_v20, 328 }
 0x183   : > { %v1268_v62 = vrot.slane %v1267_v56, 2  ;;  %v1273_v63 = vadd.f32 %v1272_v53, %v1131_v59  ;;  %v478_v59 = vld [vmem:[%s2471_s18 + $0x200] sm:$0xff] }
 0x184   : > { %v772_v1 = vpop.permute.xlu1 %771  ;;  %v768_v2 = vpop.permute.xlu0 %767 }
 0x185   : > { %v1269_v37 = vadd.f32 %v1268_v62, %v1267_v56  ;;  %v1134_v57 = vmul.f32 %v772_v1, %v467_v60  ;;  %v1133_v5 = vmul.f32 %v768_v2, %v466_v61  ;;  %v1274_v6 = vadd.f32 %v1273_v63, %v1132_v58  ;;  %v479_v58 = vld [vmem:[%s2471_s18 + $0x208] sm:$0xff]  ;;  %v481_v1 = vld [vmem:[%s2471_s18 + $0x218] sm:$0xff]  ;;  %v480_v2 = vld [vmem:[%s2471_s18 + $0x210] sm:$0xff] }
 0x186   : > { %992 = vbcast.lane.b32.xlu1 %v2578_v20, 336  ;;  %1055 = vbcast.lane.b32.xlu0 %v2586_v40, 328 }
 0x187   : > { %v1270_v10 = vrot.slane %v1269_v37, 1  ;;  %v1275_v36 = vadd.f32 %v1274_v6, %v1133_v5 }
 0x188   : > { %v780_v12 = vpop.permute.xlu1 %779  ;;  %v776_v13 = vpop.permute.xlu0 %775 }
 0x189   : > { %v1271_v14 = vadd.f32 %v1270_v10, %v1269_v37  ;;  %v1136_v25 = vmul.f32 %v780_v12, %v469_v7  ;;  %v1135_v15 = vmul.f32 %v776_v13, %v468_v9  ;;  %v1276_v16 = vadd.f32 %v1275_v36, %v1134_v57  ;;  %v483_v10 = vld [vmem:[%s2471_s18 + $0x228] sm:$0xff]  ;;  %v482_v36 = vld [vmem:[%s2471_s18 + $0x220] sm:$0xff] }
 0x18a   : > { %1059 = vbcast.lane.b32.xlu1 %v2586_v40, 336  ;;  %929 = vbcast.lane.b32.xlu0 %v2568_v8, 344 }
 0x18b   : > { %v2670_v27 = vsel %vm1387_vm2, %v1271_v14, %v1386_v17  ;;  %v1277_v28 = vadd.f32 %v1276_v16, %v1135_v15 }
 0x18c   : > { %v788_v29 = vpop.permute.xlu1 %787  ;;  %v784_v32 = vpop.permute.xlu0 %783 }
 0x18d   : > { %v1138_v33 = vmul.f32 %v788_v29, %v471_v18  ;;  %v1137_v34 = vmul.f32 %v784_v32, %v470_v19  ;;  %v1278_v35 = vadd.f32 %v1277_v28, %v1136_v25  ;;  %v485_v18 = vld [vmem:[%s2471_s18 + $0x238] sm:$0xff]  ;;  %v484_v19 = vld [vmem:[%s2471_s18 + $0x230] sm:$0xff] }
 0x18e   : > { %933 = vbcast.lane.b32.xlu1 %v2568_v8, 352  ;;  %996 = vbcast.lane.b32.xlu0 %v2578_v20, 344 }
 0x18f   : > { %v1279_v39 = vadd.f32 %v1278_v35, %v1137_v34 }
 0x190   : > { %v796_v41 = vpop.permute.xlu1 %795  ;;  %v792_v4 = vpop.permute.xlu0 %791 }
 0x191   : > { %v1140_v31 = vmul.f32 %v796_v41, %v473_v22  ;;  %v1139_v42 = vmul.f32 %v792_v4, %v472_v38  ;;  %v1280_v43 = vadd.f32 %v1279_v39, %v1138_v33  ;;  %v487_v38 = vld [vmem:[%s2471_s18 + $0x248] sm:$0xff]  ;;  %v486_v39 = vld [vmem:[%s2471_s18 + $0x240] sm:$0xff] }
 0x192   : > { %1000 = vbcast.lane.b32.xlu1 %v2578_v20, 352  ;;  %1063 = vbcast.lane.b32.xlu0 %v2586_v40, 344 }
 0x193   : > { %v1281_v45 = vadd.f32 %v1280_v43, %v1139_v42 }
 0x194   : > { %v804_v46 = vpop.permute.xlu1 %803  ;;  %v800_v47 = vpop.permute.xlu0 %799 }
 0x195   : > { %v1142_v48 = vmul.f32 %v804_v46, %v475_v44  ;;  %v1141_v30 = vmul.f32 %v800_v47, %v474_v21  ;;  %v1282_v49 = vadd.f32 %v1281_v45, %v1140_v31  ;;  %v489_v44 = vld [vmem:[%s2471_s18 + $0x258] sm:$0xff]  ;;  %v488_v21 = vld [vmem:[%s2471_s18 + $0x250] sm:$0xff] }
 0x196   : > { %1067 = vbcast.lane.b32.xlu1 %v2586_v40, 352  ;;  %937 = vbcast.lane.b32.xlu0 %v2568_v8, 360 }
 0x197   : > { %v1283_v52 = vadd.f32 %v1282_v49, %v1141_v30 }
 0x198   : > { %v812_v53 = vpop.permute.xlu1 %811  ;;  %v808_v54 = vpop.permute.xlu0 %807 }
 0x199   : > { %v1144_v24 = vmul.f32 %v812_v53, %v477_v50  ;;  %v1143_v55 = vmul.f32 %v808_v54, %v476_v51  ;;  %v1284_v56 = vadd.f32 %v1283_v52, %v1142_v48  ;;  %v491_v50 = vld [vmem:[%s2471_s18 + $0x268] sm:$0xff]  ;;  %v490_v51 = vld [vmem:[%s2471_s18 + $0x260] sm:$0xff] }
 0x19a   : > { %941 = vbcast.lane.b32.xlu1 %v2568_v8, 368  ;;  %1004 = vbcast.lane.b32.xlu0 %v2578_v20, 360 }
 0x19b   : > { %v1285_v23 = vadd.f32 %v1284_v56, %v1143_v55  ;;  %v493_v56 = vld [vmem:[%s2471_s18 + $0x278] sm:$0xff] }
 0x19c   : > { %v823_v60 = vpop.permute.xlu1 %822  ;;  %v819_v61 = vpop.permute.xlu0 %818 }
 0x19d   : > { %v1286_v62 = vadd.f32 %v1285_v23, %v1144_v24  ;;  %v1146_v63 = vmul.f32 %v823_v60, %v479_v58  ;;  %v1145_v0 = vmul.f32 %v819_v61, %v478_v59  ;;  %v492_v58 = vld [vmem:[%s2471_s18 + $0x270] sm:$0xff] }
 0x19e   : > { %1008 = vbcast.lane.b32.xlu1 %v2578_v20, 368  ;;  %1071 = vbcast.lane.b32.xlu0 %v2586_v40, 360 }
 0x19f   : > { %v1287_v37 = vrot.slane %v1286_v62, 4  ;;  %v1293_v57 = vadd.f32 %v1146_v63, %v1145_v0 }
 0x1a0   : > { %v831_v5 = vpop.permute.xlu1 %830  ;;  %v827_v6 = vpop.permute.xlu0 %826 }
 0x1a1   : > { %v1288_v26 = vadd.f32 %v1287_v37, %v1286_v62  ;;  %v1148_v7 = vmul.f32 %v831_v5, %v481_v1  ;;  %v1147_v9 = vmul.f32 %v827_v6, %v480_v2 }
 0x1a2   : > { %1075 = vbcast.lane.b32.xlu1 %v2586_v40, 368  ;;  %945 = vbcast.lane.b32.xlu0 %v2568_v8, 376 }
 0x1a3   : > { %v1289_v11 = vrot.slane %v1288_v26, 2  ;;  %v1294_v12 = vadd.f32 %v1293_v57, %v1147_v9 }
 0x1a4   : > { %v839_v13 = vpop.permute.xlu1 %838  ;;  %v835_v14 = vpop.permute.xlu0 %834 }
 0x1a5   : > { %v1290_v25 = vadd.f32 %v1289_v11, %v1288_v26  ;;  %v1150_v15 = vmul.f32 %v839_v13, %v483_v10  ;;  %v1149_v16 = vmul.f32 %v835_v14, %v482_v36  ;;  %v1295_v17 = vadd.f32 %v1294_v12, %v1148_v7 }
 0x1a6   : > { %1079 = vbcast.lane.b32.xlu1 %v2586_v40, 376  ;;  %1012 = vbcast.lane.b32.xlu0 %v2578_v20, 376 }
 0x1a7   : > { %v1291_v28 = vrot.slane %v1290_v25, 1  ;;  %v1296_v8 = vadd.f32 %v1295_v17, %v1149_v16 }
 0x1a8   : > { %v847_v29 = vpop.permute.xlu1 %846  ;;  %v843_v32 = vpop.permute.xlu0 %842 }
 0x1a9   : > { %v1292_v33 = vadd.f32 %v1291_v28, %v1290_v25  ;;  %v1152_v34 = vmul.f32 %v847_v29, %v485_v18  ;;  %v1151_v35 = vmul.f32 %v843_v32, %v484_v19  ;;  %v1297_v22 = vadd.f32 %v1296_v8, %v1150_v15 }
 0x1ab   : > { %v1390_v40 = vsel %vm1389_vm3, %v1292_v33, %v2670_v27  ;;  %v1298_v20 = vadd.f32 %v1297_v22, %v1151_v35 }
 0x1ac   : > { %v855_v41 = vpop.permute.xlu1 %854  ;;  %v851_v4 = vpop.permute.xlu0 %850 }
 0x1ad   : > { %v1154_v31 = vmul.f32 %v855_v41, %v487_v38  ;;  %v1153_v42 = vmul.f32 %v851_v4, %v486_v39  ;;  %v1299_v43 = vadd.f32 %v1298_v20, %v1152_v34 }
 0x1af   : > { %v1300_v45 = vadd.f32 %v1299_v43, %v1153_v42  ;;  %v494_v42 = vld [vmem:[%s2471_s18 + $0x280] sm:$0xff] }
 0x1b0   : > { %v863_v46 = vpop.permute.xlu1 %862  ;;  %v859_v47 = vpop.permute.xlu0 %858 }
 0x1b1   : > { %v1156_v48 = vmul.f32 %v863_v46, %v489_v44  ;;  %v1155_v30 = vmul.f32 %v859_v47, %v488_v21  ;;  %v1301_v49 = vadd.f32 %v1300_v45, %v1154_v31  ;;  %v495_v31 = vld [vmem:[%s2471_s18 + $0x288] sm:$0xff]  ;;  %v496_v21 = vld [vmem:[%s2471_s18 + $0x290] sm:$0xff]  ;;  %v510_v47 = vld [vmem:[%s2471_s18 + $0x300] sm:$0xff] }
 0x1b3   : > { %v1302_v27 = vadd.f32 %v1301_v49, %v1155_v30  ;;  %v526_v30 = vld [vmem:[%s2471_s18 + $0x380] sm:$0xff]  ;;  %v527_v49 = vld [vmem:[%s2471_s18 + $0x388] sm:$0xff] }
 0x1b4   : > { %v871_v52 = vpop.permute.xlu1 %870  ;;  %v867_v53 = vpop.permute.xlu0 %866 }
 0x1b5   : > { %v1158_v54 = vmul.f32 %v871_v52, %v491_v50  ;;  %v1157_v24 = vmul.f32 %v867_v53, %v490_v51  ;;  %v1303_v55 = vadd.f32 %v1302_v27, %v1156_v48  ;;  %v511_v48 = vld [vmem:[%s2471_s18 + $0x308] sm:$0xff]  ;;  %v497_v50 = vld [vmem:[%s2471_s18 + $0x298] sm:$0xff]  ;;  %v512_v53 = vld [vmem:[%s2471_s18 + $0x310] sm:$0xff] }
 0x1b7   : > { %v1304_v59 = vadd.f32 %v1303_v55, %v1157_v24  ;;  %v528_v55 = vld [vmem:[%s2471_s18 + $0x390] sm:$0xff] }
 0x1b8   : > { %v879_v23 = vpop.permute.xlu1 %878  ;;  %v875_v60 = vpop.permute.xlu0 %874 }
 0x1b9   : > { %v1160_v61 = vmul.f32 %v879_v23, %v493_v56  ;;  %v1159_v62 = vmul.f32 %v875_v60, %v492_v58  ;;  %v1305_v63 = vadd.f32 %v1304_v59, %v1158_v54  ;;  %v498_v56 = vld [vmem:[%s2471_s18 + $0x2a0] sm:$0xff] }
 0x1bb   : > { %v1306_v0 = vadd.f32 %v1305_v63, %v1159_v62  ;;  %v529_v63 = vld [vmem:[%s2471_s18 + $0x398] sm:$0xff] }
 0x1bc   : > { %v890_v1 = vpop.permute.xlu1 %889  ;;  %v886_v2 = vpop.permute.xlu0 %885 }
 0x1bd   : > { %v1307_v37 = vadd.f32 %v1306_v0, %v1160_v61  ;;  %v1162_v45 = vmul.f32 %v890_v1, %v495_v31  ;;  %v1161_v46 = vmul.f32 %v886_v2, %v494_v42  ;;  %v513_v61 = vld [vmem:[%s2471_s18 + $0x318] sm:$0xff]  ;;  %v499_v0 = vld [vmem:[%s2471_s18 + $0x2a8] sm:$0xff] }
 0x1be   : > { %v531_v42 = vld [vmem:[%s2471_s18 + $0x3a8] sm:$0xff] }
 0x1bf   : > { %v1308_v57 = vrot.slane %v1307_v37, 4  ;;  %v1314_v58 = vadd.f32 %v1162_v45, %v1161_v46 }
 0x1c0   : > { %v953_v5 = vpop.permute.xlu1 %952  ;;  %v894_v6 = vpop.permute.xlu0 %893 }
 0x1c1   : > { %v1309_v26 = vadd.f32 %v1308_v57, %v1307_v37  ;;  %v1163_v52 = vmul.f32 %v894_v6, %v496_v21  ;;  %v1177_v54 = vmul.f32 %v953_v5, %v510_v47  ;;  %v514_v6 = vld [vmem:[%s2471_s18 + $0x320] sm:$0xff]  ;;  %v501_v21 = vld [vmem:[%s2471_s18 + $0x2b8] sm:$0xff] }
 0x1c3   : > { %v1310_v7 = vrot.slane %v1309_v26, 2  ;;  %v1315_v37 = vadd.f32 %v1314_v58, %v1163_v52 }
 0x1c4   : > { %v1020_v9 = vpop.permute.xlu1 %1019  ;;  %v957_v10 = vpop.permute.xlu0 %956 }
 0x1c5   : > { %v1311_v36 = vadd.f32 %v1310_v7, %v1309_v26  ;;  %1403 = vadd.xlane.f32.xlu0 %v2501_v3  ;;  %v1178_v24 = vmul.f32 %v957_v10, %v511_v48  ;;  %v1193_v59 = vmul.f32 %v1020_v9, %v526_v30  ;;  %v530_v9 = vld [vmem:[%s2471_s18 + $0x3a0] sm:$0xff]  ;;  %v500_v10 = vld [vmem:[%s2471_s18 + $0x2b0] sm:$0xff] }
 0x1c6   : > { %v502_v30 = vld [vmem:[%s2471_s18 + $0x2c0] sm:$0xff] }
 0x1c7   : > { %v1312_v11 = vrot.slane %v1311_v36, 1  ;;  %v1335_v26 = vadd.f32 %v1178_v24, %v1177_v54  ;;  %v517_v54 = vld [vmem:[%s2471_s18 + $0x338] sm:$0xff] }
 0x1c8   : > { %v961_v12 = vpop.permute.xlu1 %960  ;;  %v1024_v13 = vpop.permute.xlu0 %1023 }
 0x1c9   : > { %v1313_v14 = vadd.f32 %v1312_v11, %v1311_v36  ;;  %v1194_v23 = vmul.f32 %v1024_v13, %v527_v49  ;;  %v1179_v62 = vmul.f32 %v961_v12, %v512_v53 }
 0x1cb   : > { %v2710_v25 = vsel %vm1391_vm4, %v1313_v14, %v1390_v40  ;;  %v1356_v36 = vadd.f32 %v1194_v23, %v1193_v59  ;;  %v515_v14 = vld [vmem:[%s2471_s18 + $0x328] sm:$0xff] }
 0x1cc   : > { %v1028_v15 = vpop.permute.xlu1 %1027  ;;  %v898_v16 = vpop.permute.xlu0 %897 }
 0x1cd   : > { %v1164_v60 = vmul.f32 %v898_v16, %v497_v50  ;;  %v1195_v57 = vmul.f32 %v1028_v15, %v528_v55  ;;  %v1336_v16 = vadd.f32 %v1335_v26, %v1179_v62  ;;  %v503_v55 = vld [vmem:[%s2471_s18 + $0x2c8] sm:$0xff]  ;;  %v534_v62 = vld [vmem:[%s2471_s18 + $0x3c0] sm:$0xff]  ;;  %v505_v26 = vld [vmem:[%s2471_s18 + $0x2d8] sm:$0xff] }
 0x1cf   : > { %v1316_v11 = vadd.f32 %v1315_v37, %v1164_v60  ;;  %v518_v60 = vld [vmem:[%s2471_s18 + $0x340] sm:$0xff] }
 0x1d0   : > { %v902_v17 = vpop.permute.xlu1 %901  ;;  %v965_v18 = vpop.permute.xlu0 %964 }
 0x1d1   : > { %v1165_v5 = vmul.f32 %v902_v17, %v498_v56  ;;  %v1180_v7 = vmul.f32 %v965_v18, %v513_v61  ;;  %v1357_v18 = vadd.f32 %v1356_v36, %v1195_v57 }
 0x1d3   : > { %v1317_v45 = vadd.f32 %v1316_v11, %v1165_v5  ;;  %v1337_v47 = vadd.f32 %v1336_v16, %v1180_v7  ;;  %v519_v5 = vld [vmem:[%s2471_s18 + $0x348] sm:$0xff]  ;;  %v520_v11 = vld [vmem:[%s2471_s18 + $0x350] sm:$0xff] }
 0x1d4   : > { %v969_v19 = vpop.permute.xlu1 %968  ;;  %v1032_v28 = vpop.permute.xlu0 %1031 }
 0x1d5   : > { %v1196_v12 = vmul.f32 %v1032_v28, %v529_v63  ;;  %v1181_v31 = vmul.f32 %v969_v19, %v514_v6  ;;  %v532_v19 = vld [vmem:[%s2471_s18 + $0x3b0] sm:$0xff] }
 0x1d6   : > { %v504_v63 = vld [vmem:[%s2471_s18 + $0x2d0] sm:$0xff] }
 0x1d7   : > { %v1358_v49 = vadd.f32 %v1357_v18, %v1196_v12  ;;  %v1338_v24 = vadd.f32 %v1337_v47, %v1181_v31 }
 0x1d8   : > { %v2712_v8 = vpop.permute.xlu1 %1035  ;;  %v906_v29 = vpop.permute.xlu0 %905 }
 0x1d9   : > { %v1166_v13 = vmul.f32 %v906_v29, %v499_v0  ;;  %v1197_v46 = vmul.f32 %v2712_v8, %v530_v9  ;;  %v516_v29 = vld [vmem:[%s2471_s18 + $0x330] sm:$0xff] }
 0x1db   : > { %v1318_v50 = vadd.f32 %v1317_v45, %v1166_v13  ;;  %v1359_v58 = vadd.f32 %v1358_v49, %v1197_v46  ;;  %v536_v13 = vld [vmem:[%s2471_s18 + $0x3d0] sm:$0xff]  ;;  %v507_v45 = vld [vmem:[%s2471_s18 + $0x2e8] sm:$0xff] }
 0x1dc   : > { %v2714_v32 = vpop.permute.xlu1 %909  ;;  %v2716_v3 = vpop.permute.xlu0 %972  ;;  %v508_v49 = vld [vmem:[%s2471_s18 + $0x2f0] sm:$0xff] }
 0x1dd   : > { %v1167_v28 = vmul.f32 %v2714_v32, %v500_v10  ;;  %v1182_v48 = vmul.f32 %v2716_v3, %v515_v14  ;;  %v533_v32 = vld [vmem:[%s2471_s18 + $0x3b8] sm:$0xff]  ;;  %v506_v14 = vld [vmem:[%s2471_s18 + $0x2e0] sm:$0xff] }
 0x1df   : > { %v1319_v59 = vadd.f32 %v1318_v50, %v1167_v28 }
 0x1e0   : > { %v2718_v33 = vpop.permute.xlu1 %976  ;;  %v2720_v34 = vpop.permute.xlu0 %1039 }
 0x1e1   : > { %v1198_v52 = vmul.f32 %v2720_v34, %v531_v42  ;;  %v1183_v8 = vmul.f32 %v2718_v33, %v516_v29 }
 0x1e3   : > { %v1360_v33 = vadd.f32 %v1359_v58, %v1198_v52 }
 0x1e4   : > { %v2722_v35 = vpop.permute.xlu1 %1043  ;;  %v2724_v22 = vpop.permute.xlu0 %913 }
 0x1e5   : > { %v1168_v53 = vmul.f32 %v2724_v22, %v501_v21  ;;  %v1199_v23 = vmul.f32 %v2722_v35, %v532_v19  ;;  %v1339_v22 = vadd.f32 %v1338_v24, %v1182_v48  ;;  %v521_v21 = vld [vmem:[%s2471_s18 + $0x358] sm:$0xff]  ;;  %v522_v48 = vld [vmem:[%s2471_s18 + $0x360] sm:$0xff] }
 0x1e7   : > { %v1320_v0 = vadd.f32 %v1319_v59, %v1168_v53  ;;  %v1340_v6 = vadd.f32 %v1339_v22, %v1183_v8  ;;  %v1361_v9 = vadd.f32 %v1360_v33, %v1199_v23  ;;  %v540_v22 = vld [vmem:[%s2471_s18 + $0x3f0] sm:$0xff] }
 0x1e8   : > { %v2726_v38 = vpop.permute.xlu1 %917  ;;  %v2728_v39 = vpop.permute.xlu0 %980 }
 0x1e9   : > { %v1169_v34 = vmul.f32 %v2726_v38, %v502_v30  ;;  %v1184_v61 = vmul.f32 %v2728_v39, %v517_v54  ;;  %v535_v38 = vld [vmem:[%s2471_s18 + $0x3c8] sm:$0xff]  ;;  %v538_v30 = vld [vmem:[%s2471_s18 + $0x3e0] sm:$0xff] }
 0x1ea   : > { %v523_v54 = vld [vmem:[%s2471_s18 + $0x368] sm:$0xff] }
 0x1eb   : > { %v1321_v10 = vadd.f32 %v1320_v0, %v1169_v34 }
 0x1ec   : > { %v2730_v40 = vpop.permute.xlu1 %984  ;;  %v2732_v20 = vpop.permute.xlu0 %1047 }
 0x1ed   : > { %v1200_v37 = vmul.f32 %v2732_v20, %v533_v32  ;;  %v1185_v35 = vmul.f32 %v2730_v40, %v518_v60 }
 0x1ef   : > { %v1362_v40 = vadd.f32 %v1361_v9, %v1200_v37 }
 0x1f0   : > { %v2734_v41 = vpop.permute.xlu1 %1051  ;;  %v2736_v4 = vpop.permute.xlu0 %921 }
 0x1f1   : > { %v1170_v57 = vmul.f32 %v2736_v4, %v503_v55  ;;  %v1201_v36 = vmul.f32 %v2734_v41, %v534_v62  ;;  %v1341_v4 = vadd.f32 %v1340_v6, %v1184_v61  ;;  %v539_v55 = vld [vmem:[%s2471_s18 + $0x3e8] sm:$0xff]  ;;  %v509_v61 = vld [vmem:[%s2471_s18 + $0x2f8] sm:$0xff] }
 0x1f3   : > { %v1322_v16 = vadd.f32 %v1321_v10, %v1170_v57  ;;  %v1342_v18 = vadd.f32 %v1341_v4, %v1185_v35  ;;  %v1363_v28 = vadd.f32 %v1362_v40, %v1201_v36 }
 0x1f4   : > { %v2740_v43 = vpop.permute.xlu1 %925  ;;  %v2742_v44 = vpop.permute.xlu0 %988 }
 0x1f5   : > { %v1171_v20 = vmul.f32 %v2740_v43, %v504_v63  ;;  %v1186_v12 = vmul.f32 %v2742_v44, %v519_v5  ;;  %v537_v43 = vld [vmem:[%s2471_s18 + $0x3d8] sm:$0xff] }
 0x1f7   : > { %v1323_v29 = vadd.f32 %v1322_v16, %v1171_v20  ;;  %v1343_v19 = vadd.f32 %v1342_v18, %v1186_v12 }
 0x1f8   : > { %v2750_v51 = vpop.permute.xlu1 %992  ;;  %v2752_v27 = vpop.permute.xlu0 %1055 }
 0x1f9   : > { %v1202_v31 = vmul.f32 %v2752_v27, %v535_v38  ;;  %v1187_v41 = vmul.f32 %v2750_v51, %v520_v11 }
 0x1fb   : > { %v1364_v51 = vadd.f32 %v1363_v28, %v1202_v31  ;;  %v1344_v24 = vadd.f32 %v1343_v19, %v1187_v41 }
 0x1fc   : > { %v2760_v1 = vpop.permute.xlu1 %1059  ;;  %v2762_v2 = vpop.permute.xlu0 %929 }
 0x1fd   : > { %v1172_v42 = vmul.f32 %v2762_v2, %v505_v26  ;;  %v1203_v47 = vmul.f32 %v2760_v1, %v536_v13  ;;  %v541_v26 = vld [vmem:[%s2471_s18 + $0x3f8] sm:$0xff] }
 0x1ff   : > { %v1324_v50 = vadd.f32 %v1323_v29, %v1172_v42 }
 0x200   : > { %v2770_v15 = vpop.permute.xlu1 %933  ;;  %v2772_v17 = vpop.permute.xlu0 %996 }
 0x201   : > { %v1173_v27 = vmul.f32 %v2770_v15, %v506_v14  ;;  %v1188_v2 = vmul.f32 %v2772_v17, %v521_v21  ;;  %v1365_v15 = vadd.f32 %v1364_v51, %v1203_v47  ;;  %v524_v17 = vld [vmem:[%s2471_s18 + $0x370] sm:$0xff] }
 0x203   : > { %v1325_v58 = vadd.f32 %v1324_v50, %v1173_v27  ;;  %v1345_v34 = vadd.f32 %v1344_v24, %v1188_v2 }
 0x204   : > { %v1001_v56 = vpop.permute.xlu1 %1000  ;;  %v1064_v3 = vpop.permute.xlu0 %1063 }
 0x205   : > { %v1204_v52 = vmul.f32 %v1064_v3, %v537_v43  ;;  %v1189_v8 = vmul.f32 %v1001_v56, %v522_v48 }
 0x207   : > { %v1366_v3 = vadd.f32 %v1365_v15, %v1204_v52  ;;  %v1346_v33 = vadd.f32 %v1345_v34, %v1189_v8 }
 0x208   : > { %v1068_v7 = vpop.permute.xlu1 %1067  ;;  %v938_v39 = vpop.permute.xlu0 %937 }
 0x209   : > { %v1174_v53 = vmul.f32 %v938_v39, %v507_v45  ;;  %v1205_v59 = vmul.f32 %v1068_v7, %v538_v30  ;;  %v525_v7 = vld [vmem:[%s2471_s18 + $0x378] sm:$0xff] }
 0x20b   : > { %v1326_v62 = vadd.f32 %v1325_v58, %v1174_v53  ;;  %v1367_v57 = vadd.f32 %v1366_v3, %v1205_v59  ;;  %v1402_v53 = vld [vmem:[#allocation3] sm:$0xff] }
 0x20c   : > { %v942_v46 = vpop.permute.xlu1 %941  ;;  %v1005_v44 = vpop.permute.xlu0 %1004 }
 0x20d   : > { %v1175_v23 = vmul.f32 %v942_v46, %v508_v49  ;;  %v1190_v60 = vmul.f32 %v1005_v44, %v523_v54  ;;  %v544_v49 = vld [vmem:[#allocation2] sm:$0xff] }
 0x20f   : > { %v1327_v5 = vadd.f32 %v1326_v62, %v1175_v23  ;;  %v1347_v38 = vadd.f32 %v1346_v33, %v1190_v60 }
 0x210   : > { %v1009_v1 = vpop.permute.xlu1 %1008  ;;  %v1072_v32 = vpop.permute.xlu0 %1071 }
 0x211   : > { %v1206_v63 = vmul.f32 %v1072_v32, %v539_v55  ;;  %v1191_v0 = vmul.f32 %v1009_v1, %v524_v17 }
 0x213   : > { %v1368_v39 = vadd.f32 %v1367_v57, %v1206_v63  ;;  %v1348_v10 = vadd.f32 %v1347_v38, %v1191_v0 }
 0x214   : > { %v1076_v56 = vpop.permute.xlu1 %1075  ;;  %v946_v37 = vpop.permute.xlu0 %945 }
 0x215   : > { %v1207_v6 = vmul.f32 %v1076_v56, %v540_v22  ;;  %v1176_v35 = vmul.f32 %v946_v37, %v509_v61 }
 0x217   : > { %v1328_v9 = vadd.f32 %v1327_v5, %v1176_v35  ;;  %v1369_v11 = vadd.f32 %v1368_v39, %v1207_v6 }
 0x218   : > { %v1080_v36 = vpop.permute.xlu1 %1079  ;;  %v1013_v20 = vpop.permute.xlu0 %1012 }
 0x219   : > { %v1329_v4 = vrot.slane %v1328_v9, 4  ;;  %v1208_v12 = vmul.f32 %v1080_v36, %v541_v26  ;;  %v1192_v13 = vmul.f32 %v1013_v20, %v525_v7 }
 0x21b   : > { %v1330_v14 = vadd.f32 %v1329_v4, %v1328_v9  ;;  %v1370_v40 = vadd.f32 %v1369_v11, %v1208_v12  ;;  %v1349_v16 = vadd.f32 %v1348_v10, %v1192_v13 }
 0x21d   : > { %v1331_v31 = vrot.slane %v1330_v14, 2  ;;  %v1371_v42 = vrot.slane %v1370_v40, 4  ;;  %v1350_v21 = vrot.slane %v1349_v16, 4 }
 0x21f   : > { %v1332_v18 = vadd.f32 %v1331_v31, %v1330_v14  ;;  %v1372_v41 = vadd.f32 %v1371_v42, %v1370_v40  ;;  %v1351_v43 = vadd.f32 %v1350_v21, %v1349_v16 }
 0x221   : > { %v1333_v45 = vrot.slane %v1332_v18, 1  ;;  %v1373_v46 = vrot.slane %v1372_v41, 2  ;;  %v1352_v44 = vrot.slane %v1351_v43, 2 }
 0x223   : > { %v1374_v28 = vadd.f32 %v1373_v46, %v1372_v41  ;;  %v1353_v29 = vadd.f32 %v1352_v44, %v1351_v43  ;;  %v1334_v47 = vadd.f32 %v1333_v45, %v1332_v18 }
 0x225   : > { %v1375_v27 = vrot.slane %v1374_v28, 1  ;;  %v1354_v48 = vrot.slane %v1353_v29, 1  ;;  %v1394_v30 = vsel %vm1393_vm5, %v1334_v47, %v2710_v25 }
 0x227   : > { %v1376_v19 = vadd.f32 %v1375_v27, %v1374_v28  ;;  %v1355_v2 = vadd.f32 %v1354_v48, %v1353_v29 }
 0x229   : > { %v1396_v51 = vsel %vm1395_vm6, %v1355_v2, %v1394_v30 }
 0x22a   : > { %v1398_v50 = vsel %vm1397_vm7, %v1376_v19, %v1396_v51 }
 0x22b   : > { %v1400_v52 = vadd.f32 %v1398_v50, %v544_v49 }
 0x22d   : > { %1401 = vst [vmem:[#allocation2] sm:$0xff] %v1400_v52 }
 0x24d   : > { %1411 = sbr.rel (%p1732_p6) target bundleno = 1245 (0x4dd), region = 76 }
 0x24e   : > { %v1404_v54 = vpop.xlane.xlu0 %1403 }
 0x24f   : > { %v1405_v24 = vadd.f32 %v1404_v54, %v1402_v53 }
 0x251   : > { %1407 = vst.msk [vmem:[#allocation3] sm:$0xff] %vm1406_vm8, %v1405_v24 }
 0x252   : > { %v2239_v1 = vmov 0   ;;  %v1414_v25 = vld [vmem:[#allocation2] sm:$0xff]  ;;  %v2240_v23 = vmov 0.0   ;;  %v1464_v17 = vld [vmem:[#allocation12 + $0x70] sm:$0xff]  ;;  %v1463_v34 = vld [vmem:[#allocation12 + $0x68] sm:$0xff]  ;;  %vm2241_vm9 = vmmov 0  }
 0x253   : > { %1952 = vset.pattern.permute.xlu0 %v2239_v1  ;;  %v1465_v59 = vld [vmem:[#allocation12 + $0x78] sm:$0xff]  ;;  %1758 = vmatprep.subr.mxu0 %v2240_v23  ;;  %v1462_v60 = vld [vmem:[#allocation12 + $0x60] sm:$0xff]  ;;  %v1460_v33 = vld [vmem:[#allocation12 + $0x50] sm:$0xff] }
 0x254   : > { %1759 = vmatpush3.msra.mxu0 %v1465_v59  ;;  %v1461_v63 = vld [vmem:[#allocation12 + $0x58] sm:$0xff]  ;;  %v1459_v0 = vld [vmem:[#allocation12 + $0x48] sm:$0xff]  ;;  %v1458_v56 = vld [vmem:[#allocation12 + $0x40] sm:$0xff]  ;;  %1790 = vmatprep.mubr.msk.f32.mxu0 %vm2241_vm9, %v2240_v23 }
 0x255   : > { %1760 = vmatprep.subr.mxu0 %v2240_v23  ;;  %v1457_v37 = vld [vmem:[#allocation12 + $0x38] sm:$0xff]  ;;  %v1456_v57 = vld [vmem:[#allocation12 + $0x30] sm:$0xff]  ;;  %v1455_v5 = vld [vmem:[#allocation12 + $0x28] sm:$0xff] }
 0x256   : > { %1761 = vmatpush3.msra.mxu0 %v1464_v17  ;;  %v1454_v6 = vld [vmem:[#allocation12 + $0x20] sm:$0xff]  ;;  %v1453_v35 = vld [vmem:[#allocation12 + $0x18] sm:$0xff]  ;;  %v1452_v38 = vld [vmem:[#allocation12 + $0x10] sm:$0xff] }
 0x257   : > { %1762 = vmatprep.subr.mxu0 %v2240_v23  ;;  %v1451_v26 = vld [vmem:[#allocation12 + $0x8] sm:$0xff]  ;;  %v1450_v7 = vld [vmem:[#allocation12] sm:$0xff]  ;;  %v1733_v20 = vld [vmem:[#allocation9] ss:$0 sm:$0xff] }
 0x258   : > { %v1412_v8 = vld [vmem:[#allocation3] sm:$0xff]  ;;  %1763 = vmatpush3.msra.mxu0 %v1463_v34  ;;  %v1734_v4 = vld [vmem:[#allocation10] ss:$0 sm:$0xff]  ;;  %v1735_v14 = vld [vmem:[#allocation13] ss:$0 sm:$0xff] }
 0x259   : > { %v1413_v32 = vmax.f32 %v1412_v8, 1e-09  ;;  %1764 = vmatprep.subr.mxu0 %v2240_v23 }
 0x25a   : > { %1765 = vmatpush3.msra.mxu0 %v1462_v60 }
 0x25b   : > { %1417 = vperm.xlu0 %1952, %v1413_v32   ;;  %1766 = vmatprep.subr.mxu0 %v2240_v23 }
 0x25c   : > { %1767 = vmatpush3.msra.mxu0 %v1461_v63 }
 0x25d   : > { %1768 = vmatprep.subr.mxu0 %v2240_v23 }
 0x25e   : > { %1769 = vmatpush3.msra.mxu0 %v1460_v33 }
 0x25f   : > { %1770 = vmatprep.subr.mxu0 %v2240_v23 }
 0x260   : > { %1771 = vmatpush3.msra.mxu0 %v1459_v0 }
 0x261   : > { %1772 = vmatprep.subr.mxu0 %v2240_v23 }
 0x262   : > { %1773 = vmatpush3.msra.mxu0 %v1458_v56 }
 0x263   : > { %1774 = vmatprep.subr.mxu0 %v2240_v23 }
 0x264   : > { %1775 = vmatpush3.msra.mxu0 %v1457_v37 }
 0x265   : > { %1776 = vmatprep.subr.mxu0 %v2240_v23 }
 0x266   : > { %1777 = vmatpush3.msra.mxu0 %v1456_v57 }
 0x267   : > { %1778 = vmatprep.subr.mxu0 %v2240_v23 }
 0x268   : > { %1779 = vmatpush3.msra.mxu0 %v1455_v5 }
 0x269   : > { %1780 = vmatprep.subr.mxu0 %v2240_v23 }
 0x26a   : > { %1781 = vmatpush3.msra.mxu0 %v1454_v6 }
 0x26b   : > { %1782 = vmatprep.subr.mxu0 %v2240_v23 }
 0x26c   : > { %1783 = vmatpush3.msra.mxu0 %v1453_v35 }
 0x26d   : > { %1784 = vmatprep.subr.mxu0 %v2240_v23 }
 0x26e   : > { %1785 = vmatpush3.msra.mxu0 %v1452_v38 }
 0x26f   : > { %1786 = vmatprep.subr.mxu0 %v2240_v23 }
 0x270   : > { %1787 = vmatpush3.msra.mxu0 %v1451_v26 }
 0x271   : > { %1788 = vmatprep.subr.mxu0 %v2240_v23 }
 0x272   : > { %1789 = vmatpush3.msra.mxu0 %v1450_v7 }
 0x2d6   : > { %v1418_v55 = vpop.permute.xlu0 %1417 }
 0x2d7   : > { %1953 = vrcp.f32 %v1418_v55 }
 0x2e4   : > { %v1954_v15 = vpop.eup %1953 }
 0x2e5   : > { %v1421_v58 = vmul.f32 %v1954_v15, %v1414_v25 }
 0x2e7   : > { %1422 = vadd.xlane.f32.xlu0 %v1421_v58 }
 0x370   : > { %v1423_v22 = vpop.xlane.xlu0 %1422 }
 0x371   : > { %v1425_v61 = vmul.f32 0.0078125, %v1423_v22 }
 0x373   : > { %v1426_v3 = vsub.f32 %v1421_v58, %v1425_v61 }
 0x375   : > { %v1427_v62 = vmul.f32 %v1426_v3, %v1426_v3 }
 0x377   : > { %1428 = vadd.xlane.f32.xlu1 %v1427_v62 }
 0x400   : > { %v1429_v39 = vpop.xlane.xlu1 %1428 }
 0x401   : > { %v1430_v9 = vmul.f32 0.0078125, %v1429_v39 }
 0x403   : > { %v1431_v10 = vadd.f32 1e-05, %v1430_v9 }
 0x405   : > { %1955 = vrsqrt.f32 %v1431_v10 }
 0x412   : > { %v1956_v36 = vpop.eup %1955 }
 0x413   : > { %v1433_v11 = vmul.f32 %v1956_v36, %v1426_v3 }
 0x415   : > { %v1441_v12 = vmul.f32 %v1733_v20, %v1433_v11 }
 0x417   : > { %v1449_v13 = vadd.f32 %v1734_v4, %v1441_v12 }
 0x419   : > { %1791 = vmatmul.mubr.f32.vlgmr.msra.gmra.mxu0 %v1449_v13 }
 0x4d9   : > { %v1539_v40 = vpop.f32.mrf.mxu0 }
 0x4da   : > { %v1540_v16 = vadd.f32 %v1735_v14, %v1539_v40 }
 0x4db   : > { %v1792_v31 = vpop.f32.mrf.mxu0 }
 0x4dc   : > { %1543 = vst [vmem:[%s404_s4] sm:$0xff] %v1540_v16 }
 0x4dd PF: > { %s1737_s27 = sshll.u32 %s2211_s28, 7  ;;  %s2935_s20 = sld [smem:[#allocation38_spill]] }
 0x4de   : > { %s1558_s10 = sshll.u32 %s404_s4, 4  ;;  %s1545_s2 = scalar_lea.sflag [#allocation6], %s402_s16  ;;  %s1559_s10 = int_to_ptr.vmem [resolvable:$true] %s1558_s10 }
 0x4df   : > { %s2087_s9 = scalar_lea.vmem %s1559_s10, 128  ;;  %p2936_p1 = scmp.ne.s32.totalorder %s2915_s19, 0 }
 0x4e0   : > { %p2088_p11 = scmp.ne.s32.totalorder %s1559_s10, %s2087_s9  ;;  %s2242_s24 = smov [#allocation15]  }
 0x4e1   : > { %s2091_s5 = sshll.u32 %s2242_s24, 4  ;;  %s2092_s5 = int_to_ptr.vmem [resolvable:$false] %s2091_s5 }
 0x4e2   : > { %p2089_p13 = pnand %p2088_p11, %p2936_p1  ;;  %s2093_s15 = scalar_lea.vmem %s2092_s5, 256 }
 0x4e3   : > { %s1556_s12 = scalar_lea.hbm %s2935_s20, %s1737_s27  ;;  %p2094_p7 = scmp.lt.s32.totalorder %s1559_s10, %s2092_s5 }
 0x4e4   : > { %p2090_p4 = pneg %p2089_p13  ;;  %p2095_p12 = scmp.lt.s32.totalorder %s2093_s15, %s2087_s9 }
 0x4e6   : > { %p2096_p3 = por %p2095_p12, %p2094_p7 }
 0x4e8   : > { %p2097_p5 = pnand %p2096_p3, %p2090_p4 }
 0x4ea   : > { %2100 = shalt.err (!%p2097_p5)
}
 0x4eb   : > { %s2101_s28 = scalar_lea.hbm %s1556_s12, 128  ;;  %s2105_s26 = scalar_lea.hbm %s2935_s20, 256 }
 0x4ec   : > { %p2102_p0 = scmp.ne.s32.totalorder %s1556_s12, %s2101_s28  ;;  %p2106_p9 = scmp.lt.s32.totalorder %s1556_s12, %s2935_s20 }
 0x4ed   : > { %p2107_p10 = scmp.lt.s32.totalorder %s2105_s26, %s2101_s28 }
 0x4ee   : > { %p2103_p2 = pnand %p2102_p0, %p2936_p1 }
 0x4ef   : > { %p2108_p6 = por %p2107_p10, %p2106_p9 }
 0x4f0   : > { %p2104_p8 = pneg %p2103_p2 }
 0x4f2   : > { %p2109_p11 = pnand %p2108_p6, %p2104_p8 }
 0x4f4   : > { %2112 = shalt.err (!%p2109_p11)
}
 0x4f5   : > { %1820 = dma.vmem_to_hbm [thread:$0]  (%p2936_p1), %s1559_s10, 128, %s1556_s12, %s1545_s2  }
 0x4f6 PF: > { %s2937_s6 = sld [smem:[#allocation25_spill]]  ;;  %p1847_p13 = scmp.ge.s32.totalorder %s2223_s7, 2 }
 0x4f7   : > { %s2938_s21 = sld [smem:[#allocation32_spill]] }
 0x4fc   : > { %s1570_s14 = sand.u32 1, %s2937_s6  }
 0x4fd   : > { %p2939_p4 = scmp.ne.s32.totalorder %s2938_s21, 0  ;;  %s1571_s3 = scalar_lea.sflag [#allocation6], %s1570_s14 }
 0x4ff   : > { %p1836_p7 = pnand %p1847_p13, %p2939_p4 }
 0x501   : > { %p1837_p12 = pneg %p1836_p7 }
 0x503   : > { %2178 = dma.done.wait (%p1837_p12), %s1571_s3, 128  }
 0x504   : > { %2180 = vsyncadd (%p1837_p12), %s1571_s3, 4294967168  ;;  %s27_s7 = sadd.s32 1, %s2223_s7   ;;  %s2940_s16 = sld [smem:[#allocation26_spill]] }
 0x505   : > { %p24_p3 = scmp.ge.s32.totalorder %s27_s7, 6   ;;  %s2941_s23 = sld [smem:[#allocation30_spill]] }
 0x506   : > { %s2942_s19 = sld [smem:[#allocation27_spill]]  ;;  %s2946_s21 = smov %s2187_s22 }
 0x507   : > { %s2943_s26 = sld [smem:[#allocation31_spill]]  ;;  %s2948_s24 = smov %s2199_s25 }
 0x508   : > { %s2944_s13 = sld [smem:[#allocation28_spill]]  ;;  %s2950_s27 = smov %s2215_s29 }
 0x509   : > { %s2945_s4 = sld [smem:[#allocation29_spill]]  ;;  %s2951_s28 = smov %s2219_s30 }
 0x50a   : > { %s2947_s22 = smov %s2940_s16 }
 0x50b   :  { %26 = sbr.rel (!%p24_p3) target bundleno = 20 (0x14), region = 131 }
 0x50c   : > { %s2949_s25 = smov %s2942_s19 }
 0x50e   : > { %s2952_s29 = smov %s2944_s13 }
 0x50f   : > { %s2953_s30 = smov %s2945_s4 }
 0x510   :  { %1576 = vsyncpa [#allocation5], 1 }
 0x511   :  { %1578 = vsyncpa [#allocation5 + $0x1], 1 }
 0x512   :  { %1579 = vsyncpa [#allocation8], 1 }
 0x513   :  { %1581 = vsyncpa [#allocation8 + $0x1], 1 }
 0x514   :  { %1582 = vsyncpa [#allocation11], 1 }
 0x515   :  { %1583 = vsyncpa [#allocation14], 1 }
 0x516   :  { %1584 = vsyncpa [#allocation6], 1 }
 0x517   :  { %1586 = vsyncpa [#allocation6 + $0x1], 1 }

</bundles_post_ra>
